<compile_context>
chip_gen: v7x
topology: tpu7x:2x2x1
jax: 0.10.0
libtpu: 0.0.40
codegen_flags: <defaults>
</compile_context>

<pallas_src>
import functools
import math

import jax
import jax.numpy as jnp
from jax.experimental import pallas as pl
from jax.experimental.pallas import tpu as pltpu


# --------------------------- fused encoder kernel ----------------------------

def _encoder_kernel(*refs, num_layers, num_heads, head_dim, eps, scale):
    """Processes ONE batch element (S, H) end-to-end; grid axis = batch."""
    x_ref, bias_ref, emb_g_ref, emb_b_ref = refs[:4]
    per_layer = 12
    layer_refs = refs[4:4 + per_layer * num_layers]
    cls_w_ref, cls_b_ref, o_ref = refs[4 + per_layer * num_layers:]

    H = num_heads * head_dim

    def layernorm(y, g_ref, b_ref):
        mu = jnp.mean(y, axis=-1, keepdims=True)
        yc = y - mu
        var = jnp.mean(yc * yc, axis=-1, keepdims=True)
        return yc * jax.lax.rsqrt(var + eps) * g_ref[...] + b_ref[...]

    x = x_ref[...]                      # (S, H)  summed embeddings, one batch elem
    bias = bias_ref[...]                # (1, S)  additive attention mask

    # RoBERTa embedding LayerNorm (no residual).
    x = layernorm(x, emb_g_ref, emb_b_ref)

    for l in range(num_layers):
        (wqkv, bqkv, wo, bo, aln_g, aln_b,
         w1, b1, w2, b2, fln_g, fln_b) = layer_refs[per_layer * l:per_layer * (l + 1)]

        # ---- fused QKV projection: single MXU pass, N = 3H output lanes ----
        qkv = jnp.dot(x, wqkv[...], preferred_element_type=jnp.float32) + bqkv[...]

        # ---- multi-head self-attention, all heads in this one grid step ----
        # Output projection is accumulated per head:
        #   sum_h o_h @ Wo[h*Dh:(h+1)*Dh, :]  ==  concat(heads) @ Wo
        attn_out = None
        for h in range(num_heads):
            q = qkv[:, h * head_dim:(h + 1) * head_dim]                  # (S, Dh)
            k = qkv[:, H + h * head_dim:H + (h + 1) * head_dim]          # (S, Dh)
            v = qkv[:, 2 * H + h * head_dim:2 * H + (h + 1) * head_dim]  # (S, Dh)

            # Contract on the last dim of both operands -> no explicit k.T.
            s = jax.lax.dot_general(q, k, (((1,), (1,)), ((), ())),
                                    preferred_element_type=jnp.float32) * scale
            s = s + bias                                                 # mask pad keys
            m = jnp.max(s, axis=-1, keepdims=True)
            p = jnp.exp(s - m)
            denom = jnp.sum(p, axis=-1, keepdims=True)
            p = p * pl.reciprocal(denom, approx=True)                    # EUP, not VALU
            o_h = jnp.dot(p, v, preferred_element_type=jnp.float32)      # (S, Dh)

            contrib = jnp.dot(o_h, wo[h * head_dim:(h + 1) * head_dim, :],
                              preferred_element_type=jnp.float32)        # (S, H)
            attn_out = contrib if attn_out is None else attn_out + contrib

        attn_out = attn_out + bo[...]
        x = layernorm(attn_out + x, aln_g, aln_b)

        # ---- feed-forward ----
        h1 = jnp.dot(x, w1[...], preferred_element_type=jnp.float32) + b1[...]
        # TODO(synk): HF RoBERTa uses exact erf-GELU; tanh approximation used
        # here for portable Mosaic lowering (per-element drift ~1e-3).
        h1 = jax.nn.gelu(h1, approximate=True)
        h2 = jnp.dot(h1, w2[...], preferred_element_type=jnp.float32) + b2[...]
        x = layernorm(h2 + x, fln_g, fln_b)

    # ---- CLS pool -> dropout (identity at eval) -> classifier (lane-padded) ----
    pooled = x[0:1, :]                                                   # (1, H)
    logits = jnp.dot(pooled, cls_w_ref[...],
                     preferred_element_type=jnp.float32) + cls_b_ref[...]
    o_ref[...] = logits.astype(o_ref.dtype)                              # (1, 128) dense


def encoder_forward(params, x_emb, attn_bias, cfg):
    """x_emb: [B, S, H] summed embeddings; attn_bias: [B, 1, S] additive mask."""
    B, S, H = x_emb.shape
    NH = cfg.num_heads
    Dh = H // NH
    L = cfg.num_layers
    NPAD = 128                           # lane-dense classifier output width

    row = lambda v: v.reshape(1, -1)

    inputs = [x_emb, attn_bias,
              row(params["emb_ln_g"]), row(params["emb_ln_b"])]
    in_specs = [
        pl.BlockSpec((None, S, H), lambda b: (b, 0, 0)),     # per-batch activations
        pl.BlockSpec((None, 1, S), lambda b: (b, 0, 0)),     # per-batch mask
        pl.BlockSpec((1, H), lambda b: (0, 0)),
        pl.BlockSpec((1, H), lambda b: (0, 0)),
    ]

    def add_full(a):
        inputs.append(a)
        in_specs.append(pl.BlockSpec(a.shape, lambda b: (0, 0)))

    for lyr in params["layers"]:
        add_full(lyr["wqkv"]); add_full(row(lyr["bqkv"]))
        add_full(lyr["wo"]); add_full(row(lyr["bo"]))
        add_full(row(lyr["attn_ln_g"])); add_full(row(lyr["attn_ln_b"]))
        add_full(lyr["w1"]); add_full(row(lyr["b1"]))
        add_full(lyr["w2"]); add_full(row(lyr["b2"]))
        add_full(row(lyr["ffn_ln_g"])); add_full(row(lyr["ffn_ln_b"]))

    # Zero-pad the classifier to 128 output lanes (unmasked vst); slice after.
    cls_w_pad = jnp.zeros((H, NPAD), jnp.float32).at[:, :cfg.num_labels].set(
        params["cls_w"])
    cls_b_pad = jnp.zeros((1, NPAD), jnp.float32).at[0, :cfg.num_labels].set(
        params["cls_b"])
    add_full(cls_w_pad); add_full(cls_b_pad)

    logits_pad = pl.pallas_call(
        functools.partial(_encoder_kernel, num_layers=L, num_heads=NH,
                          head_dim=Dh, eps=cfg.layer_norm_eps,
                          scale=1.0 / math.sqrt(Dh)),
        out_shape=jax.ShapeDtypeStruct((B, 1, NPAD), jnp.float32),
        grid=(B,),
        in_specs=in_specs,
        out_specs=pl.BlockSpec((None, 1, NPAD), lambda b: (b, 0, 0)),
        compiler_params=pltpu.CompilerParams(
            dimension_semantics=("parallel",)),     # 2-TC sharding on v7x
    )(*inputs)
    return logits_pad.reshape(B, NPAD)[:, :cfg.num_labels]


# --------------------------- model definition --------------------------------

class Config:
    vocab_size = 64
    hidden_size = 32
    num_heads = 4
    num_layers = 2
    intermediate_size = 64
    max_position_embeddings = 24
    type_vocab_size = 1
    pad_token_id = 1          # RoBERTa padding_idx
    layer_norm_eps = 1e-5
    num_labels = 5


def init_params(key, cfg):
    std = 0.02
    H, I = cfg.hidden_size, cfg.intermediate_size
    keys = iter(jax.random.split(key, 64))

    def normal(shape):
        return std * jax.random.normal(next(keys), shape, jnp.float32)

    params = {
        "word_emb": normal((cfg.vocab_size, H)),
        "pos_emb": normal((cfg.max_position_embeddings, H)),
        "type_emb": normal((cfg.type_vocab_size, H)),
        "emb_ln_g": jnp.ones((H,), jnp.float32),
        "emb_ln_b": jnp.zeros((H,), jnp.float32),
        "cls_w": normal((H, cfg.num_labels)),
        "cls_b": jnp.zeros((cfg.num_labels,), jnp.float32),
        "layers": [],
    }
    for _ in range(cfg.num_layers):
        params["layers"].append({
            # Q, K, V projections stored pre-concatenated: [H, 3H].
            "wqkv": normal((H, 3 * H)), "bqkv": jnp.zeros((3 * H,), jnp.float32),
            "wo": normal((H, H)), "bo": jnp.zeros((H,), jnp.float32),
            "attn_ln_g": jnp.ones((H,), jnp.float32),
            "attn_ln_b": jnp.zeros((H,), jnp.float32),
            "w1": normal((H, I)), "b1": jnp.zeros((I,), jnp.float32),
            "w2": normal((I, H)), "b2": jnp.zeros((H,), jnp.float32),
            "ffn_ln_g": jnp.ones((H,), jnp.float32),
            "ffn_ln_b": jnp.zeros((H,), jnp.float32),
        })
    return params


def destination_recommender_forward(params, input_ids, attention_mask, cfg):
    """Mirrors DestinationRecommender.forward (eval mode: dropout = identity)."""
    B, S = input_ids.shape

    mask_f = attention_mask.astype(jnp.float32)
    # RoBERTa-style position ids: cumsum over non-pad positions + padding_idx.
    pos_ids = jnp.cumsum(attention_mask, axis=1) * attention_mask + cfg.pad_token_id
    # Embedding gathers are XLA glue (no clean tiny-table Pallas equivalent).
    emb = (params["word_emb"][input_ids]
           + params["pos_emb"][pos_ids]
           + params["type_emb"][0])
    x_emb = emb.astype(jnp.float32)                         # (B, S, H)
    attn_bias = ((1.0 - mask_f) * -1e9).reshape(B, 1, S)    # additive mask

    return encoder_forward(params, x_emb, attn_bias, cfg)


# --------------------------------- main ---------------------------------------

if __name__ == "__main__":
    cfg = Config()
    key = jax.random.PRNGKey(0)
    pkey, ikey = jax.random.split(key)
    params = init_params(pkey, cfg)

    B, S = 2, 8
    input_ids = jax.random.randint(ikey, (B, S), 2, cfg.vocab_size, dtype=jnp.int32)
    input_ids = input_ids.at[:, 0].set(0)                          # <s> / CLS token
    attention_mask = jnp.ones((B, S), jnp.int32).at[1, 6:].set(0)  # some padding
    input_ids = jnp.where(attention_mask == 1, input_ids, cfg.pad_token_id)

    logits = destination_recommender_forward(params, input_ids, attention_mask, cfg)
    logits = jax.block_until_ready(logits)
    assert logits.shape == (B, cfg.num_labels)
    assert bool(jnp.all(jnp.isfinite(logits)))
    print("KERNEL_OK")
</pallas_src>

<mosaic_0001>
module attributes {stable_mosaic.version = 11 : i64} {
  func.func @_encoder_kernel(%arg0: i32, %arg1: memref<1x8x32xf32, #tpu.memory_space<vmem>>, %arg2: memref<1x1x8xf32, #tpu.memory_space<vmem>>, %arg3: memref<1x32xf32, #tpu.memory_space<vmem>>, %arg4: memref<1x32xf32, #tpu.memory_space<vmem>>, %arg5: memref<32x96xf32, #tpu.memory_space<vmem>>, %arg6: memref<1x96xf32, #tpu.memory_space<vmem>>, %arg7: memref<32x32xf32, #tpu.memory_space<vmem>>, %arg8: memref<1x32xf32, #tpu.memory_space<vmem>>, %arg9: memref<1x32xf32, #tpu.memory_space<vmem>>, %arg10: memref<1x32xf32, #tpu.memory_space<vmem>>, %arg11: memref<32x64xf32, #tpu.memory_space<vmem>>, %arg12: memref<1x64xf32, #tpu.memory_space<vmem>>, %arg13: memref<64x32xf32, #tpu.memory_space<vmem>>, %arg14: memref<1x32xf32, #tpu.memory_space<vmem>>, %arg15: memref<1x32xf32, #tpu.memory_space<vmem>>, %arg16: memref<1x32xf32, #tpu.memory_space<vmem>>, %arg17: memref<32x96xf32, #tpu.memory_space<vmem>>, %arg18: memref<1x96xf32, #tpu.memory_space<vmem>>, %arg19: memref<32x32xf32, #tpu.memory_space<vmem>>, %arg20: memref<1x32xf32, #tpu.memory_space<vmem>>, %arg21: memref<1x32xf32, #tpu.memory_space<vmem>>, %arg22: memref<1x32xf32, #tpu.memory_space<vmem>>, %arg23: memref<32x64xf32, #tpu.memory_space<vmem>>, %arg24: memref<1x64xf32, #tpu.memory_space<vmem>>, %arg25: memref<64x32xf32, #tpu.memory_space<vmem>>, %arg26: memref<1x32xf32, #tpu.memory_space<vmem>>, %arg27: memref<1x32xf32, #tpu.memory_space<vmem>>, %arg28: memref<1x32xf32, #tpu.memory_space<vmem>>, %arg29: memref<32x128xf32, #tpu.memory_space<vmem>>, %arg30: memref<1x128xf32, #tpu.memory_space<vmem>>, %arg31: memref<1x1x128xf32, #tpu.memory_space<vmem>>) attributes {dimension_semantics = [#tpu.dimension_semantics<parallel>], iteration_bounds = array<i64: 2>, scalar_prefetch = 0 : i64, scratch_operands = 0 : i64, tpu.core_type = #tpu.core_type<tc>, window_params = [{transform_indices = @transform_0, window_bounds = array<i64: 1, 8, 32>}, {transform_indices = @transform_1, window_bounds = array<i64: 1, 1, 8>}, {pipeline_mode = #tpu.pipeline_mode<synchronous>, transform_indices = @transform_2, window_bounds = array<i64: 1, 32>}, {pipeline_mode = #tpu.pipeline_mode<synchronous>, transform_indices = @transform_3, window_bounds = array<i64: 1, 32>}, {pipeline_mode = #tpu.pipeline_mode<synchronous>, transform_indices = @transform_4, window_bounds = array<i64: 32, 96>}, {pipeline_mode = #tpu.pipeline_mode<synchronous>, transform_indices = @transform_5, window_bounds = array<i64: 1, 96>}, {pipeline_mode = #tpu.pipeline_mode<synchronous>, transform_indices = @transform_6, window_bounds = array<i64: 32, 32>}, {pipeline_mode = #tpu.pipeline_mode<synchronous>, transform_indices = @transform_7, window_bounds = array<i64: 1, 32>}, {pipeline_mode = #tpu.pipeline_mode<synchronous>, transform_indices = @transform_8, window_bounds = array<i64: 1, 32>}, {pipeline_mode = #tpu.pipeline_mode<synchronous>, transform_indices = @transform_9, window_bounds = array<i64: 1, 32>}, {pipeline_mode = #tpu.pipeline_mode<synchronous>, transform_indices = @transform_10, window_bounds = array<i64: 32, 64>}, {pipeline_mode = #tpu.pipeline_mode<synchronous>, transform_indices = @transform_11, window_bounds = array<i64: 1, 64>}, {pipeline_mode = #tpu.pipeline_mode<synchronous>, transform_indices = @transform_12, window_bounds = array<i64: 64, 32>}, {pipeline_mode = #tpu.pipeline_mode<synchronous>, transform_indices = @transform_13, window_bounds = array<i64: 1, 32>}, {pipeline_mode = #tpu.pipeline_mode<synchronous>, transform_indices = @transform_14, window_bounds = array<i64: 1, 32>}, {pipeline_mode = #tpu.pipeline_mode<synchronous>, transform_indices = @transform_15, window_bounds = array<i64: 1, 32>}, {pipeline_mode = #tpu.pipeline_mode<synchronous>, transform_indices = @transform_16, window_bounds = array<i64: 32, 96>}, {pipeline_mode = #tpu.pipeline_mode<synchronous>, transform_indices = @transform_17, window_bounds = array<i64: 1, 96>}, {pipeline_mode = #tpu.pipeline_mode<synchronous>, transform_indices = @transform_18, window_bounds = array<i64: 32, 32>}, {pipeline_mode = #tpu.pipeline_mode<synchronous>, transform_indices = @transform_19, window_bounds = array<i64: 1, 32>}, {pipeline_mode = #tpu.pipeline_mode<synchronous>, transform_indices = @transform_20, window_bounds = array<i64: 1, 32>}, {pipeline_mode = #tpu.pipeline_mode<synchronous>, transform_indices = @transform_21, window_bounds = array<i64: 1, 32>}, {pipeline_mode = #tpu.pipeline_mode<synchronous>, transform_indices = @transform_22, window_bounds = array<i64: 32, 64>}, {pipeline_mode = #tpu.pipeline_mode<synchronous>, transform_indices = @transform_23, window_bounds = array<i64: 1, 64>}, {pipeline_mode = #tpu.pipeline_mode<synchronous>, transform_indices = @transform_24, window_bounds = array<i64: 64, 32>}, {pipeline_mode = #tpu.pipeline_mode<synchronous>, transform_indices = @transform_25, window_bounds = array<i64: 1, 32>}, {pipeline_mode = #tpu.pipeline_mode<synchronous>, transform_indices = @transform_26, window_bounds = array<i64: 1, 32>}, {pipeline_mode = #tpu.pipeline_mode<synchronous>, transform_indices = @transform_27, window_bounds = array<i64: 1, 32>}, {pipeline_mode = #tpu.pipeline_mode<synchronous>, transform_indices = @transform_28, window_bounds = array<i64: 32, 128>}, {pipeline_mode = #tpu.pipeline_mode<synchronous>, transform_indices = @transform_29, window_bounds = array<i64: 1, 128>}, {transform_indices = @transform_30, window_bounds = array<i64: 1, 1, 128>}]} {
    %c0 = arith.constant 0 : index
    %c0_0 = arith.constant 0 : index
    %c0_1 = arith.constant 0 : index
    %0 = vector.load %arg1[%c0, %c0_0, %c0_1] : memref<1x8x32xf32, #tpu.memory_space<vmem>>, vector<1x8x32xf32>
    %1 = vector.shape_cast %0 : vector<1x8x32xf32> to vector<8x32xf32>
    %c0_2 = arith.constant 0 : index
    %c0_3 = arith.constant 0 : index
    %c0_4 = arith.constant 0 : index
    %2 = vector.load %arg2[%c0_2, %c0_3, %c0_4] : memref<1x1x8xf32, #tpu.memory_space<vmem>>, vector<1x1x8xf32>
    %3 = vector.shape_cast %2 : vector<1x1x8xf32> to vector<1x8xf32>
    %cst = arith.constant dense<0.000000e+00> : vector<8xf32>
    %4 = vector.multi_reduction <add>, %1, %cst [1] : vector<8x32xf32> to vector<8xf32>
    %5 = vector.shape_cast %4 : vector<8xf32> to vector<8x1xf32>
    %cst_5 = arith.constant 3.200000e+01 : f32
    %6 = vector.broadcast %cst_5 : f32 to vector<8x1xf32>
    %7 = arith.divf %5, %6 : vector<8x1xf32>
    %8 = vector.broadcast %7 : vector<8x1xf32> to vector<8x32xf32>
    %9 = arith.subf %1, %8 : vector<8x32xf32>
    %10 = arith.mulf %9, %9 : vector<8x32xf32>
    %cst_6 = arith.constant dense<0.000000e+00> : vector<8xf32>
    %11 = vector.multi_reduction <add>, %10, %cst_6 [1] : vector<8x32xf32> to vector<8xf32>
    %12 = vector.shape_cast %11 : vector<8xf32> to vector<8x1xf32>
    %cst_7 = arith.constant 3.200000e+01 : f32
    %13 = vector.broadcast %cst_7 : f32 to vector<8x1xf32>
    %14 = arith.divf %12, %13 : vector<8x1xf32>
    %cst_8 = arith.constant 9.99999974E-6 : f32
    %15 = vector.broadcast %cst_8 : f32 to vector<8x1xf32>
    %16 = arith.addf %14, %15 : vector<8x1xf32>
    %17 = math.rsqrt %16 : vector<8x1xf32>
    %18 = vector.broadcast %17 : vector<8x1xf32> to vector<8x32xf32>
    %19 = arith.mulf %9, %18 : vector<8x32xf32>
    %c0_9 = arith.constant 0 : index
    %c0_10 = arith.constant 0 : index
    %20 = vector.load %arg3[%c0_9, %c0_10] : memref<1x32xf32, #tpu.memory_space<vmem>>, vector<1x32xf32>
    %21 = vector.broadcast %20 : vector<1x32xf32> to vector<8x32xf32>
    %22 = arith.mulf %19, %21 : vector<8x32xf32>
    %c0_11 = arith.constant 0 : index
    %c0_12 = arith.constant 0 : index
    %23 = vector.load %arg4[%c0_11, %c0_12] : memref<1x32xf32, #tpu.memory_space<vmem>>, vector<1x32xf32>
    %24 = vector.broadcast %23 : vector<1x32xf32> to vector<8x32xf32>
    %25 = arith.addf %22, %24 : vector<8x32xf32>
    %c0_13 = arith.constant 0 : index
    %c0_14 = arith.constant 0 : index
    %26 = vector.load %arg5[%c0_13, %c0_14] : memref<32x96xf32, #tpu.memory_space<vmem>>, vector<32x96xf32>
    %cst_15 = arith.constant dense<0.000000e+00> : vector<8x96xf32>
    %27 = tpu.matmul %25, %26, %cst_15 {dimension_numbers = #tpu.dot_dimension_numbers<[1], [0], [0], [1], [0, 0, 1, 1], [], []>} : vector<8x32xf32>, vector<32x96xf32>, vector<8x96xf32> -> vector<8x96xf32>
    %c0_16 = arith.constant 0 : index
    %c0_17 = arith.constant 0 : index
    %28 = vector.load %arg6[%c0_16, %c0_17] : memref<1x96xf32, #tpu.memory_space<vmem>>, vector<1x96xf32>
    %29 = vector.broadcast %28 : vector<1x96xf32> to vector<8x96xf32>
    %30 = arith.addf %27, %29 : vector<8x96xf32>
    %31 = vector.extract_strided_slice %30 {offsets = [0, 0], sizes = [8, 8], strides = [1, 1]} : vector<8x96xf32> to vector<8x8xf32>
    %32 = vector.extract_strided_slice %30 {offsets = [0, 32], sizes = [8, 8], strides = [1, 1]} : vector<8x96xf32> to vector<8x8xf32>
    %33 = vector.extract_strided_slice %30 {offsets = [0, 64], sizes = [8, 8], strides = [1, 1]} : vector<8x96xf32> to vector<8x8xf32>
    %cst_18 = arith.constant dense<0.000000e+00> : vector<8x8xf32>
    %34 = tpu.matmul %31, %32, %cst_18 {dimension_numbers = #tpu.dot_dimension_numbers<[1], [1], [0], [0], [0, 0, 1, 0], [], []>} : vector<8x8xf32>, vector<8x8xf32>, vector<8x8xf32> -> vector<8x8xf32>
    %cst_19 = arith.constant 0.353553385 : f32
    %35 = vector.broadcast %cst_19 : f32 to vector<8x8xf32>
    %36 = arith.mulf %34, %35 : vector<8x8xf32>
    %37 = vector.broadcast %3 : vector<1x8xf32> to vector<8x8xf32>
    %38 = arith.addf %36, %37 : vector<8x8xf32>
    %cst_20 = arith.constant dense<0xFF800000> : vector<8xf32>
    %39 = vector.multi_reduction <maximumf>, %38, %cst_20 [1] : vector<8x8xf32> to vector<8xf32>
    %40 = vector.shape_cast %39 : vector<8xf32> to vector<8x1xf32>
    %41 = vector.broadcast %40 : vector<8x1xf32> to vector<8x8xf32>
    %42 = arith.subf %38, %41 : vector<8x8xf32>
    %43 = math.exp %42 : vector<8x8xf32>
    %cst_21 = arith.constant dense<0.000000e+00> : vector<8xf32>
    %44 = vector.multi_reduction <add>, %43, %cst_21 [1] : vector<8x8xf32> to vector<8xf32>
    %45 = vector.shape_cast %44 : vector<8xf32> to vector<8x1xf32>
    %46 = tpu.reciprocal %45 {approx = true} : vector<8x1xf32> -> vector<8x1xf32>
    %47 = vector.broadcast %46 : vector<8x1xf32> to vector<8x8xf32>
    %48 = arith.mulf %43, %47 : vector<8x8xf32>
    %cst_22 = arith.constant dense<0.000000e+00> : vector<8x8xf32>
    %49 = tpu.matmul %48, %33, %cst_22 {dimension_numbers = #tpu.dot_dimension_numbers<[1], [0], [0], [1], [0, 0, 1, 1], [], []>} : vector<8x8xf32>, vector<8x8xf32>, vector<8x8xf32> -> vector<8x8xf32>
    %c0_23 = arith.constant 0 : index
    %c0_24 = arith.constant 0 : index
    %50 = vector.load %arg7[%c0_23, %c0_24] : memref<32x32xf32, #tpu.memory_space<vmem>>, vector<8x32xf32>
    %cst_25 = arith.constant dense<0.000000e+00> : vector<8x32xf32>
    %51 = tpu.matmul %49, %50, %cst_25 {dimension_numbers = #tpu.dot_dimension_numbers<[1], [0], [0], [1], [0, 0, 1, 1], [], []>} : vector<8x8xf32>, vector<8x32xf32>, vector<8x32xf32> -> vector<8x32xf32>
    %52 = vector.extract_strided_slice %30 {offsets = [0, 8], sizes = [8, 8], strides = [1, 1]} : vector<8x96xf32> to vector<8x8xf32>
    %53 = vector.extract_strided_slice %30 {offsets = [0, 40], sizes = [8, 8], strides = [1, 1]} : vector<8x96xf32> to vector<8x8xf32>
    %54 = vector.extract_strided_slice %30 {offsets = [0, 72], sizes = [8, 8], strides = [1, 1]} : vector<8x96xf32> to vector<8x8xf32>
    %cst_26 = arith.constant dense<0.000000e+00> : vector<8x8xf32>
    %55 = tpu.matmul %52, %53, %cst_26 {dimension_numbers = #tpu.dot_dimension_numbers<[1], [1], [0], [0], [0, 0, 1, 0], [], []>} : vector<8x8xf32>, vector<8x8xf32>, vector<8x8xf32> -> vector<8x8xf32>
    %cst_27 = arith.constant 0.353553385 : f32
    %56 = vector.broadcast %cst_27 : f32 to vector<8x8xf32>
    %57 = arith.mulf %55, %56 : vector<8x8xf32>
    %58 = vector.broadcast %3 : vector<1x8xf32> to vector<8x8xf32>
    %59 = arith.addf %57, %58 : vector<8x8xf32>
    %cst_28 = arith.constant dense<0xFF800000> : vector<8xf32>
    %60 = vector.multi_reduction <maximumf>, %59, %cst_28 [1] : vector<8x8xf32> to vector<8xf32>
    %61 = vector.shape_cast %60 : vector<8xf32> to vector<8x1xf32>
    %62 = vector.broadcast %61 : vector<8x1xf32> to vector<8x8xf32>
    %63 = arith.subf %59, %62 : vector<8x8xf32>
    %64 = math.exp %63 : vector<8x8xf32>
    %cst_29 = arith.constant dense<0.000000e+00> : vector<8xf32>
    %65 = vector.multi_reduction <add>, %64, %cst_29 [1] : vector<8x8xf32> to vector<8xf32>
    %66 = vector.shape_cast %65 : vector<8xf32> to vector<8x1xf32>
    %67 = tpu.reciprocal %66 {approx = true} : vector<8x1xf32> -> vector<8x1xf32>
    %68 = vector.broadcast %67 : vector<8x1xf32> to vector<8x8xf32>
    %69 = arith.mulf %64, %68 : vector<8x8xf32>
    %cst_30 = arith.constant dense<0.000000e+00> : vector<8x8xf32>
    %70 = tpu.matmul %69, %54, %cst_30 {dimension_numbers = #tpu.dot_dimension_numbers<[1], [0], [0], [1], [0, 0, 1, 1], [], []>} : vector<8x8xf32>, vector<8x8xf32>, vector<8x8xf32> -> vector<8x8xf32>
    %c8 = arith.constant 8 : index
    %c0_31 = arith.constant 0 : index
    %71 = vector.load %arg7[%c8, %c0_31] : memref<32x32xf32, #tpu.memory_space<vmem>>, vector<8x32xf32>
    %cst_32 = arith.constant dense<0.000000e+00> : vector<8x32xf32>
    %72 = tpu.matmul %70, %71, %cst_32 {dimension_numbers = #tpu.dot_dimension_numbers<[1], [0], [0], [1], [0, 0, 1, 1], [], []>} : vector<8x8xf32>, vector<8x32xf32>, vector<8x32xf32> -> vector<8x32xf32>
    %73 = arith.addf %51, %72 : vector<8x32xf32>
    %74 = vector.extract_strided_slice %30 {offsets = [0, 16], sizes = [8, 8], strides = [1, 1]} : vector<8x96xf32> to vector<8x8xf32>
    %75 = vector.extract_strided_slice %30 {offsets = [0, 48], sizes = [8, 8], strides = [1, 1]} : vector<8x96xf32> to vector<8x8xf32>
    %76 = vector.extract_strided_slice %30 {offsets = [0, 80], sizes = [8, 8], strides = [1, 1]} : vector<8x96xf32> to vector<8x8xf32>
    %cst_33 = arith.constant dense<0.000000e+00> : vector<8x8xf32>
    %77 = tpu.matmul %74, %75, %cst_33 {dimension_numbers = #tpu.dot_dimension_numbers<[1], [1], [0], [0], [0, 0, 1, 0], [], []>} : vector<8x8xf32>, vector<8x8xf32>, vector<8x8xf32> -> vector<8x8xf32>
    %cst_34 = arith.constant 0.353553385 : f32
    %78 = vector.broadcast %cst_34 : f32 to vector<8x8xf32>
    %79 = arith.mulf %77, %78 : vector<8x8xf32>
    %80 = vector.broadcast %3 : vector<1x8xf32> to vector<8x8xf32>
    %81 = arith.addf %79, %80 : vector<8x8xf32>
    %cst_35 = arith.constant dense<0xFF800000> : vector<8xf32>
    %82 = vector.multi_reduction <maximumf>, %81, %cst_35 [1] : vector<8x8xf32> to vector<8xf32>
    %83 = vector.shape_cast %82 : vector<8xf32> to vector<8x1xf32>
    %84 = vector.broadcast %83 : vector<8x1xf32> to vector<8x8xf32>
    %85 = arith.subf %81, %84 : vector<8x8xf32>
    %86 = math.exp %85 : vector<8x8xf32>
    %cst_36 = arith.constant dense<0.000000e+00> : vector<8xf32>
    %87 = vector.multi_reduction <add>, %86, %cst_36 [1] : vector<8x8xf32> to vector<8xf32>
    %88 = vector.shape_cast %87 : vector<8xf32> to vector<8x1xf32>
    %89 = tpu.reciprocal %88 {approx = true} : vector<8x1xf32> -> vector<8x1xf32>
    %90 = vector.broadcast %89 : vector<8x1xf32> to vector<8x8xf32>
    %91 = arith.mulf %86, %90 : vector<8x8xf32>
    %cst_37 = arith.constant dense<0.000000e+00> : vector<8x8xf32>
    %92 = tpu.matmul %91, %76, %cst_37 {dimension_numbers = #tpu.dot_dimension_numbers<[1], [0], [0], [1], [0, 0, 1, 1], [], []>} : vector<8x8xf32>, vector<8x8xf32>, vector<8x8xf32> -> vector<8x8xf32>
    %c16 = arith.constant 16 : index
    %c0_38 = arith.constant 0 : index
    %93 = vector.load %arg7[%c16, %c0_38] : memref<32x32xf32, #tpu.memory_space<vmem>>, vector<8x32xf32>
    %cst_39 = arith.constant dense<0.000000e+00> : vector<8x32xf32>
    %94 = tpu.matmul %92, %93, %cst_39 {dimension_numbers = #tpu.dot_dimension_numbers<[1], [0], [0], [1], [0, 0, 1, 1], [], []>} : vector<8x8xf32>, vector<8x32xf32>, vector<8x32xf32> -> vector<8x32xf32>
    %95 = arith.addf %73, %94 : vector<8x32xf32>
    %96 = vector.extract_strided_slice %30 {offsets = [0, 24], sizes = [8, 8], strides = [1, 1]} : vector<8x96xf32> to vector<8x8xf32>
    %97 = vector.extract_strided_slice %30 {offsets = [0, 56], sizes = [8, 8], strides = [1, 1]} : vector<8x96xf32> to vector<8x8xf32>
    %98 = vector.extract_strided_slice %30 {offsets = [0, 88], sizes = [8, 8], strides = [1, 1]} : vector<8x96xf32> to vector<8x8xf32>
    %cst_40 = arith.constant dense<0.000000e+00> : vector<8x8xf32>
    %99 = tpu.matmul %96, %97, %cst_40 {dimension_numbers = #tpu.dot_dimension_numbers<[1], [1], [0], [0], [0, 0, 1, 0], [], []>} : vector<8x8xf32>, vector<8x8xf32>, vector<8x8xf32> -> vector<8x8xf32>
    %cst_41 = arith.constant 0.353553385 : f32
    %100 = vector.broadcast %cst_41 : f32 to vector<8x8xf32>
    %101 = arith.mulf %99, %100 : vector<8x8xf32>
    %102 = vector.broadcast %3 : vector<1x8xf32> to vector<8x8xf32>
    %103 = arith.addf %101, %102 : vector<8x8xf32>
    %cst_42 = arith.constant dense<0xFF800000> : vector<8xf32>
    %104 = vector.multi_reduction <maximumf>, %103, %cst_42 [1] : vector<8x8xf32> to vector<8xf32>
    %105 = vector.shape_cast %104 : vector<8xf32> to vector<8x1xf32>
    %106 = vector.broadcast %105 : vector<8x1xf32> to vector<8x8xf32>
    %107 = arith.subf %103, %106 : vector<8x8xf32>
    %108 = math.exp %107 : vector<8x8xf32>
    %cst_43 = arith.constant dense<0.000000e+00> : vector<8xf32>
    %109 = vector.multi_reduction <add>, %108, %cst_43 [1] : vector<8x8xf32> to vector<8xf32>
    %110 = vector.shape_cast %109 : vector<8xf32> to vector<8x1xf32>
    %111 = tpu.reciprocal %110 {approx = true} : vector<8x1xf32> -> vector<8x1xf32>
    %112 = vector.broadcast %111 : vector<8x1xf32> to vector<8x8xf32>
    %113 = arith.mulf %108, %112 : vector<8x8xf32>
    %cst_44 = arith.constant dense<0.000000e+00> : vector<8x8xf32>
    %114 = tpu.matmul %113, %98, %cst_44 {dimension_numbers = #tpu.dot_dimension_numbers<[1], [0], [0], [1], [0, 0, 1, 1], [], []>} : vector<8x8xf32>, vector<8x8xf32>, vector<8x8xf32> -> vector<8x8xf32>
    %c24 = arith.constant 24 : index
    %c0_45 = arith.constant 0 : index
    %115 = vector.load %arg7[%c24, %c0_45] : memref<32x32xf32, #tpu.memory_space<vmem>>, vector<8x32xf32>
    %cst_46 = arith.constant dense<0.000000e+00> : vector<8x32xf32>
    %116 = tpu.matmul %114, %115, %cst_46 {dimension_numbers = #tpu.dot_dimension_numbers<[1], [0], [0], [1], [0, 0, 1, 1], [], []>} : vector<8x8xf32>, vector<8x32xf32>, vector<8x32xf32> -> vector<8x32xf32>
    %117 = arith.addf %95, %116 : vector<8x32xf32>
    %c0_47 = arith.constant 0 : index
    %c0_48 = arith.constant 0 : index
    %118 = vector.load %arg8[%c0_47, %c0_48] : memref<1x32xf32, #tpu.memory_space<vmem>>, vector<1x32xf32>
    %119 = vector.broadcast %118 : vector<1x32xf32> to vector<8x32xf32>
    %120 = arith.addf %117, %119 : vector<8x32xf32>
    %121 = arith.addf %120, %25 : vector<8x32xf32>
    %cst_49 = arith.constant dense<0.000000e+00> : vector<8xf32>
    %122 = vector.multi_reduction <add>, %121, %cst_49 [1] : vector<8x32xf32> to vector<8xf32>
    %123 = vector.shape_cast %122 : vector<8xf32> to vector<8x1xf32>
    %cst_50 = arith.constant 3.200000e+01 : f32
    %124 = vector.broadcast %cst_50 : f32 to vector<8x1xf32>
    %125 = arith.divf %123, %124 : vector<8x1xf32>
    %126 = vector.broadcast %125 : vector<8x1xf32> to vector<8x32xf32>
    %127 = arith.subf %121, %126 : vector<8x32xf32>
    %128 = arith.mulf %127, %127 : vector<8x32xf32>
    %cst_51 = arith.constant dense<0.000000e+00> : vector<8xf32>
    %129 = vector.multi_reduction <add>, %128, %cst_51 [1] : vector<8x32xf32> to vector<8xf32>
    %130 = vector.shape_cast %129 : vector<8xf32> to vector<8x1xf32>
    %cst_52 = arith.constant 3.200000e+01 : f32
    %131 = vector.broadcast %cst_52 : f32 to vector<8x1xf32>
    %132 = arith.divf %130, %131 : vector<8x1xf32>
    %cst_53 = arith.constant 9.99999974E-6 : f32
    %133 = vector.broadcast %cst_53 : f32 to vector<8x1xf32>
    %134 = arith.addf %132, %133 : vector<8x1xf32>
    %135 = math.rsqrt %134 : vector<8x1xf32>
    %136 = vector.broadcast %135 : vector<8x1xf32> to vector<8x32xf32>
    %137 = arith.mulf %127, %136 : vector<8x32xf32>
    %c0_54 = arith.constant 0 : index
    %c0_55 = arith.constant 0 : index
    %138 = vector.load %arg9[%c0_54, %c0_55] : memref<1x32xf32, #tpu.memory_space<vmem>>, vector<1x32xf32>
    %139 = vector.broadcast %138 : vector<1x32xf32> to vector<8x32xf32>
    %140 = arith.mulf %137, %139 : vector<8x32xf32>
    %c0_56 = arith.constant 0 : index
    %c0_57 = arith.constant 0 : index
    %141 = vector.load %arg10[%c0_56, %c0_57] : memref<1x32xf32, #tpu.memory_space<vmem>>, vector<1x32xf32>
    %142 = vector.broadcast %141 : vector<1x32xf32> to vector<8x32xf32>
    %143 = arith.addf %140, %142 : vector<8x32xf32>
    %c0_58 = arith.constant 0 : index
    %c0_59 = arith.constant 0 : index
    %144 = vector.load %arg11[%c0_58, %c0_59] : memref<32x64xf32, #tpu.memory_space<vmem>>, vector<32x64xf32>
    %cst_60 = arith.constant dense<0.000000e+00> : vector<8x64xf32>
    %145 = tpu.matmul %143, %144, %cst_60 {dimension_numbers = #tpu.dot_dimension_numbers<[1], [0], [0], [1], [0, 0, 1, 1], [], []>} : vector<8x32xf32>, vector<32x64xf32>, vector<8x64xf32> -> vector<8x64xf32>
    %c0_61 = arith.constant 0 : index
    %c0_62 = arith.constant 0 : index
    %146 = vector.load %arg12[%c0_61, %c0_62] : memref<1x64xf32, #tpu.memory_space<vmem>>, vector<1x64xf32>
    %147 = vector.broadcast %146 : vector<1x64xf32> to vector<8x64xf32>
    %148 = arith.addf %145, %147 : vector<8x64xf32>
    %149 = arith.mulf %148, %148 : vector<8x64xf32>
    %150 = arith.mulf %148, %149 : vector<8x64xf32>
    %cst_63 = arith.constant 4.471500e-02 : f32
    %151 = vector.broadcast %cst_63 : f32 to vector<8x64xf32>
    %152 = arith.mulf %151, %150 : vector<8x64xf32>
    %153 = arith.addf %148, %152 : vector<8x64xf32>
    %cst_64 = arith.constant 0.797884583 : f32
    %154 = vector.broadcast %cst_64 : f32 to vector<8x64xf32>
    %155 = arith.mulf %154, %153 : vector<8x64xf32>
    %156 = math.tanh %155 : vector<8x64xf32>
    %cst_65 = arith.constant 1.000000e+00 : f32
    %157 = vector.broadcast %cst_65 : f32 to vector<8x64xf32>
    %158 = arith.addf %157, %156 : vector<8x64xf32>
    %cst_66 = arith.constant 5.000000e-01 : f32
    %159 = vector.broadcast %cst_66 : f32 to vector<8x64xf32>
    %160 = arith.mulf %159, %158 : vector<8x64xf32>
    %161 = arith.mulf %148, %160 : vector<8x64xf32>
    %c0_67 = arith.constant 0 : index
    %c0_68 = arith.constant 0 : index
    %162 = vector.load %arg13[%c0_67, %c0_68] : memref<64x32xf32, #tpu.memory_space<vmem>>, vector<64x32xf32>
    %cst_69 = arith.constant dense<0.000000e+00> : vector<8x32xf32>
    %163 = tpu.matmul %161, %162, %cst_69 {dimension_numbers = #tpu.dot_dimension_numbers<[1], [0], [0], [1], [0, 0, 1, 1], [], []>} : vector<8x64xf32>, vector<64x32xf32>, vector<8x32xf32> -> vector<8x32xf32>
    %c0_70 = arith.constant 0 : index
    %c0_71 = arith.constant 0 : index
    %164 = vector.load %arg14[%c0_70, %c0_71] : memref<1x32xf32, #tpu.memory_space<vmem>>, vector<1x32xf32>
    %165 = vector.broadcast %164 : vector<1x32xf32> to vector<8x32xf32>
    %166 = arith.addf %163, %165 : vector<8x32xf32>
    %167 = arith.addf %166, %143 : vector<8x32xf32>
    %cst_72 = arith.constant dense<0.000000e+00> : vector<8xf32>
    %168 = vector.multi_reduction <add>, %167, %cst_72 [1] : vector<8x32xf32> to vector<8xf32>
    %169 = vector.shape_cast %168 : vector<8xf32> to vector<8x1xf32>
    %cst_73 = arith.constant 3.200000e+01 : f32
    %170 = vector.broadcast %cst_73 : f32 to vector<8x1xf32>
    %171 = arith.divf %169, %170 : vector<8x1xf32>
    %172 = vector.broadcast %171 : vector<8x1xf32> to vector<8x32xf32>
    %173 = arith.subf %167, %172 : vector<8x32xf32>
    %174 = arith.mulf %173, %173 : vector<8x32xf32>
    %cst_74 = arith.constant dense<0.000000e+00> : vector<8xf32>
    %175 = vector.multi_reduction <add>, %174, %cst_74 [1] : vector<8x32xf32> to vector<8xf32>
    %176 = vector.shape_cast %175 : vector<8xf32> to vector<8x1xf32>
    %cst_75 = arith.constant 3.200000e+01 : f32
    %177 = vector.broadcast %cst_75 : f32 to vector<8x1xf32>
    %178 = arith.divf %176, %177 : vector<8x1xf32>
    %cst_76 = arith.constant 9.99999974E-6 : f32
    %179 = vector.broadcast %cst_76 : f32 to vector<8x1xf32>
    %180 = arith.addf %178, %179 : vector<8x1xf32>
    %181 = math.rsqrt %180 : vector<8x1xf32>
    %182 = vector.broadcast %181 : vector<8x1xf32> to vector<8x32xf32>
    %183 = arith.mulf %173, %182 : vector<8x32xf32>
    %c0_77 = arith.constant 0 : index
    %c0_78 = arith.constant 0 : index
    %184 = vector.load %arg15[%c0_77, %c0_78] : memref<1x32xf32, #tpu.memory_space<vmem>>, vector<1x32xf32>
    %185 = vector.broadcast %184 : vector<1x32xf32> to vector<8x32xf32>
    %186 = arith.mulf %183, %185 : vector<8x32xf32>
    %c0_79 = arith.constant 0 : index
    %c0_80 = arith.constant 0 : index
    %187 = vector.load %arg16[%c0_79, %c0_80] : memref<1x32xf32, #tpu.memory_space<vmem>>, vector<1x32xf32>
    %188 = vector.broadcast %187 : vector<1x32xf32> to vector<8x32xf32>
    %189 = arith.addf %186, %188 : vector<8x32xf32>
    %c0_81 = arith.constant 0 : index
    %c0_82 = arith.constant 0 : index
    %190 = vector.load %arg17[%c0_81, %c0_82] : memref<32x96xf32, #tpu.memory_space<vmem>>, vector<32x96xf32>
    %cst_83 = arith.constant dense<0.000000e+00> : vector<8x96xf32>
    %191 = tpu.matmul %189, %190, %cst_83 {dimension_numbers = #tpu.dot_dimension_numbers<[1], [0], [0], [1], [0, 0, 1, 1], [], []>} : vector<8x32xf32>, vector<32x96xf32>, vector<8x96xf32> -> vector<8x96xf32>
    %c0_84 = arith.constant 0 : index
    %c0_85 = arith.constant 0 : index
    %192 = vector.load %arg18[%c0_84, %c0_85] : memref<1x96xf32, #tpu.memory_space<vmem>>, vector<1x96xf32>
    %193 = vector.broadcast %192 : vector<1x96xf32> to vector<8x96xf32>
    %194 = arith.addf %191, %193 : vector<8x96xf32>
    %195 = vector.extract_strided_slice %194 {offsets = [0, 0], sizes = [8, 8], strides = [1, 1]} : vector<8x96xf32> to vector<8x8xf32>
    %196 = vector.extract_strided_slice %194 {offsets = [0, 32], sizes = [8, 8], strides = [1, 1]} : vector<8x96xf32> to vector<8x8xf32>
    %197 = vector.extract_strided_slice %194 {offsets = [0, 64], sizes = [8, 8], strides = [1, 1]} : vector<8x96xf32> to vector<8x8xf32>
    %cst_86 = arith.constant dense<0.000000e+00> : vector<8x8xf32>
    %198 = tpu.matmul %195, %196, %cst_86 {dimension_numbers = #tpu.dot_dimension_numbers<[1], [1], [0], [0], [0, 0, 1, 0], [], []>} : vector<8x8xf32>, vector<8x8xf32>, vector<8x8xf32> -> vector<8x8xf32>
    %cst_87 = arith.constant 0.353553385 : f32
    %199 = vector.broadcast %cst_87 : f32 to vector<8x8xf32>
    %200 = arith.mulf %198, %199 : vector<8x8xf32>
    %201 = vector.broadcast %3 : vector<1x8xf32> to vector<8x8xf32>
    %202 = arith.addf %200, %201 : vector<8x8xf32>
    %cst_88 = arith.constant dense<0xFF800000> : vector<8xf32>
    %203 = vector.multi_reduction <maximumf>, %202, %cst_88 [1] : vector<8x8xf32> to vector<8xf32>
    %204 = vector.shape_cast %203 : vector<8xf32> to vector<8x1xf32>
    %205 = vector.broadcast %204 : vector<8x1xf32> to vector<8x8xf32>
    %206 = arith.subf %202, %205 : vector<8x8xf32>
    %207 = math.exp %206 : vector<8x8xf32>
    %cst_89 = arith.constant dense<0.000000e+00> : vector<8xf32>
    %208 = vector.multi_reduction <add>, %207, %cst_89 [1] : vector<8x8xf32> to vector<8xf32>
    %209 = vector.shape_cast %208 : vector<8xf32> to vector<8x1xf32>
    %210 = tpu.reciprocal %209 {approx = true} : vector<8x1xf32> -> vector<8x1xf32>
    %211 = vector.broadcast %210 : vector<8x1xf32> to vector<8x8xf32>
    %212 = arith.mulf %207, %211 : vector<8x8xf32>
    %cst_90 = arith.constant dense<0.000000e+00> : vector<8x8xf32>
    %213 = tpu.matmul %212, %197, %cst_90 {dimension_numbers = #tpu.dot_dimension_numbers<[1], [0], [0], [1], [0, 0, 1, 1], [], []>} : vector<8x8xf32>, vector<8x8xf32>, vector<8x8xf32> -> vector<8x8xf32>
    %c0_91 = arith.constant 0 : index
    %c0_92 = arith.constant 0 : index
    %214 = vector.load %arg19[%c0_91, %c0_92] : memref<32x32xf32, #tpu.memory_space<vmem>>, vector<8x32xf32>
    %cst_93 = arith.constant dense<0.000000e+00> : vector<8x32xf32>
    %215 = tpu.matmul %213, %214, %cst_93 {dimension_numbers = #tpu.dot_dimension_numbers<[1], [0], [0], [1], [0, 0, 1, 1], [], []>} : vector<8x8xf32>, vector<8x32xf32>, vector<8x32xf32> -> vector<8x32xf32>
    %216 = vector.extract_strided_slice %194 {offsets = [0, 8], sizes = [8, 8], strides = [1, 1]} : vector<8x96xf32> to vector<8x8xf32>
    %217 = vector.extract_strided_slice %194 {offsets = [0, 40], sizes = [8, 8], strides = [1, 1]} : vector<8x96xf32> to vector<8x8xf32>
    %218 = vector.extract_strided_slice %194 {offsets = [0, 72], sizes = [8, 8], strides = [1, 1]} : vector<8x96xf32> to vector<8x8xf32>
    %cst_94 = arith.constant dense<0.000000e+00> : vector<8x8xf32>
    %219 = tpu.matmul %216, %217, %cst_94 {dimension_numbers = #tpu.dot_dimension_numbers<[1], [1], [0], [0], [0, 0, 1, 0], [], []>} : vector<8x8xf32>, vector<8x8xf32>, vector<8x8xf32> -> vector<8x8xf32>
    %cst_95 = arith.constant 0.353553385 : f32
    %220 = vector.broadcast %cst_95 : f32 to vector<8x8xf32>
    %221 = arith.mulf %219, %220 : vector<8x8xf32>
    %222 = vector.broadcast %3 : vector<1x8xf32> to vector<8x8xf32>
    %223 = arith.addf %221, %222 : vector<8x8xf32>
    %cst_96 = arith.constant dense<0xFF800000> : vector<8xf32>
    %224 = vector.multi_reduction <maximumf>, %223, %cst_96 [1] : vector<8x8xf32> to vector<8xf32>
    %225 = vector.shape_cast %224 : vector<8xf32> to vector<8x1xf32>
    %226 = vector.broadcast %225 : vector<8x1xf32> to vector<8x8xf32>
    %227 = arith.subf %223, %226 : vector<8x8xf32>
    %228 = math.exp %227 : vector<8x8xf32>
    %cst_97 = arith.constant dense<0.000000e+00> : vector<8xf32>
    %229 = vector.multi_reduction <add>, %228, %cst_97 [1] : vector<8x8xf32> to vector<8xf32>
    %230 = vector.shape_cast %229 : vector<8xf32> to vector<8x1xf32>
    %231 = tpu.reciprocal %230 {approx = true} : vector<8x1xf32> -> vector<8x1xf32>
    %232 = vector.broadcast %231 : vector<8x1xf32> to vector<8x8xf32>
    %233 = arith.mulf %228, %232 : vector<8x8xf32>
    %cst_98 = arith.constant dense<0.000000e+00> : vector<8x8xf32>
    %234 = tpu.matmul %233, %218, %cst_98 {dimension_numbers = #tpu.dot_dimension_numbers<[1], [0], [0], [1], [0, 0, 1, 1], [], []>} : vector<8x8xf32>, vector<8x8xf32>, vector<8x8xf32> -> vector<8x8xf32>
    %c8_99 = arith.constant 8 : index
    %c0_100 = arith.constant 0 : index
    %235 = vector.load %arg19[%c8_99, %c0_100] : memref<32x32xf32, #tpu.memory_space<vmem>>, vector<8x32xf32>
    %cst_101 = arith.constant dense<0.000000e+00> : vector<8x32xf32>
    %236 = tpu.matmul %234, %235, %cst_101 {dimension_numbers = #tpu.dot_dimension_numbers<[1], [0], [0], [1], [0, 0, 1, 1], [], []>} : vector<8x8xf32>, vector<8x32xf32>, vector<8x32xf32> -> vector<8x32xf32>
    %237 = arith.addf %215, %236 : vector<8x32xf32>
    %238 = vector.extract_strided_slice %194 {offsets = [0, 16], sizes = [8, 8], strides = [1, 1]} : vector<8x96xf32> to vector<8x8xf32>
    %239 = vector.extract_strided_slice %194 {offsets = [0, 48], sizes = [8, 8], strides = [1, 1]} : vector<8x96xf32> to vector<8x8xf32>
    %240 = vector.extract_strided_slice %194 {offsets = [0, 80], sizes = [8, 8], strides = [1, 1]} : vector<8x96xf32> to vector<8x8xf32>
    %cst_102 = arith.constant dense<0.000000e+00> : vector<8x8xf32>
    %241 = tpu.matmul %238, %239, %cst_102 {dimension_numbers = #tpu.dot_dimension_numbers<[1], [1], [0], [0], [0, 0, 1, 0], [], []>} : vector<8x8xf32>, vector<8x8xf32>, vector<8x8xf32> -> vector<8x8xf32>
    %cst_103 = arith.constant 0.353553385 : f32
    %242 = vector.broadcast %cst_103 : f32 to vector<8x8xf32>
    %243 = arith.mulf %241, %242 : vector<8x8xf32>
    %244 = vector.broadcast %3 : vector<1x8xf32> to vector<8x8xf32>
    %245 = arith.addf %243, %244 : vector<8x8xf32>
    %cst_104 = arith.constant dense<0xFF800000> : vector<8xf32>
    %246 = vector.multi_reduction <maximumf>, %245, %cst_104 [1] : vector<8x8xf32> to vector<8xf32>
    %247 = vector.shape_cast %246 : vector<8xf32> to vector<8x1xf32>
    %248 = vector.broadcast %247 : vector<8x1xf32> to vector<8x8xf32>
    %249 = arith.subf %245, %248 : vector<8x8xf32>
    %250 = math.exp %249 : vector<8x8xf32>
    %cst_105 = arith.constant dense<0.000000e+00> : vector<8xf32>
    %251 = vector.multi_reduction <add>, %250, %cst_105 [1] : vector<8x8xf32> to vector<8xf32>
    %252 = vector.shape_cast %251 : vector<8xf32> to vector<8x1xf32>
    %253 = tpu.reciprocal %252 {approx = true} : vector<8x1xf32> -> vector<8x1xf32>
    %254 = vector.broadcast %253 : vector<8x1xf32> to vector<8x8xf32>
    %255 = arith.mulf %250, %254 : vector<8x8xf32>
    %cst_106 = arith.constant dense<0.000000e+00> : vector<8x8xf32>
    %256 = tpu.matmul %255, %240, %cst_106 {dimension_numbers = #tpu.dot_dimension_numbers<[1], [0], [0], [1], [0, 0, 1, 1], [], []>} : vector<8x8xf32>, vector<8x8xf32>, vector<8x8xf32> -> vector<8x8xf32>
    %c16_107 = arith.constant 16 : index
    %c0_108 = arith.constant 0 : index
    %257 = vector.load %arg19[%c16_107, %c0_108] : memref<32x32xf32, #tpu.memory_space<vmem>>, vector<8x32xf32>
    %cst_109 = arith.constant dense<0.000000e+00> : vector<8x32xf32>
    %258 = tpu.matmul %256, %257, %cst_109 {dimension_numbers = #tpu.dot_dimension_numbers<[1], [0], [0], [1], [0, 0, 1, 1], [], []>} : vector<8x8xf32>, vector<8x32xf32>, vector<8x32xf32> -> vector<8x32xf32>
    %259 = arith.addf %237, %258 : vector<8x32xf32>
    %260 = vector.extract_strided_slice %194 {offsets = [0, 24], sizes = [8, 8], strides = [1, 1]} : vector<8x96xf32> to vector<8x8xf32>
    %261 = vector.extract_strided_slice %194 {offsets = [0, 56], sizes = [8, 8], strides = [1, 1]} : vector<8x96xf32> to vector<8x8xf32>
    %262 = vector.extract_strided_slice %194 {offsets = [0, 88], sizes = [8, 8], strides = [1, 1]} : vector<8x96xf32> to vector<8x8xf32>
    %cst_110 = arith.constant dense<0.000000e+00> : vector<8x8xf32>
    %263 = tpu.matmul %260, %261, %cst_110 {dimension_numbers = #tpu.dot_dimension_numbers<[1], [1], [0], [0], [0, 0, 1, 0], [], []>} : vector<8x8xf32>, vector<8x8xf32>, vector<8x8xf32> -> vector<8x8xf32>
    %cst_111 = arith.constant 0.353553385 : f32
    %264 = vector.broadcast %cst_111 : f32 to vector<8x8xf32>
    %265 = arith.mulf %263, %264 : vector<8x8xf32>
    %266 = vector.broadcast %3 : vector<1x8xf32> to vector<8x8xf32>
    %267 = arith.addf %265, %266 : vector<8x8xf32>
    %cst_112 = arith.constant dense<0xFF800000> : vector<8xf32>
    %268 = vector.multi_reduction <maximumf>, %267, %cst_112 [1] : vector<8x8xf32> to vector<8xf32>
    %269 = vector.shape_cast %268 : vector<8xf32> to vector<8x1xf32>
    %270 = vector.broadcast %269 : vector<8x1xf32> to vector<8x8xf32>
    %271 = arith.subf %267, %270 : vector<8x8xf32>
    %272 = math.exp %271 : vector<8x8xf32>
    %cst_113 = arith.constant dense<0.000000e+00> : vector<8xf32>
    %273 = vector.multi_reduction <add>, %272, %cst_113 [1] : vector<8x8xf32> to vector<8xf32>
    %274 = vector.shape_cast %273 : vector<8xf32> to vector<8x1xf32>
    %275 = tpu.reciprocal %274 {approx = true} : vector<8x1xf32> -> vector<8x1xf32>
    %276 = vector.broadcast %275 : vector<8x1xf32> to vector<8x8xf32>
    %277 = arith.mulf %272, %276 : vector<8x8xf32>
    %cst_114 = arith.constant dense<0.000000e+00> : vector<8x8xf32>
    %278 = tpu.matmul %277, %262, %cst_114 {dimension_numbers = #tpu.dot_dimension_numbers<[1], [0], [0], [1], [0, 0, 1, 1], [], []>} : vector<8x8xf32>, vector<8x8xf32>, vector<8x8xf32> -> vector<8x8xf32>
    %c24_115 = arith.constant 24 : index
    %c0_116 = arith.constant 0 : index
    %279 = vector.load %arg19[%c24_115, %c0_116] : memref<32x32xf32, #tpu.memory_space<vmem>>, vector<8x32xf32>
    %cst_117 = arith.constant dense<0.000000e+00> : vector<8x32xf32>
    %280 = tpu.matmul %278, %279, %cst_117 {dimension_numbers = #tpu.dot_dimension_numbers<[1], [0], [0], [1], [0, 0, 1, 1], [], []>} : vector<8x8xf32>, vector<8x32xf32>, vector<8x32xf32> -> vector<8x32xf32>
    %281 = arith.addf %259, %280 : vector<8x32xf32>
    %c0_118 = arith.constant 0 : index
    %c0_119 = arith.constant 0 : index
    %282 = vector.load %arg20[%c0_118, %c0_119] : memref<1x32xf32, #tpu.memory_space<vmem>>, vector<1x32xf32>
    %283 = vector.broadcast %282 : vector<1x32xf32> to vector<8x32xf32>
    %284 = arith.addf %281, %283 : vector<8x32xf32>
    %285 = arith.addf %284, %189 : vector<8x32xf32>
    %cst_120 = arith.constant dense<0.000000e+00> : vector<8xf32>
    %286 = vector.multi_reduction <add>, %285, %cst_120 [1] : vector<8x32xf32> to vector<8xf32>
    %287 = vector.shape_cast %286 : vector<8xf32> to vector<8x1xf32>
    %cst_121 = arith.constant 3.200000e+01 : f32
    %288 = vector.broadcast %cst_121 : f32 to vector<8x1xf32>
    %289 = arith.divf %287, %288 : vector<8x1xf32>
    %290 = vector.broadcast %289 : vector<8x1xf32> to vector<8x32xf32>
    %291 = arith.subf %285, %290 : vector<8x32xf32>
    %292 = arith.mulf %291, %291 : vector<8x32xf32>
    %cst_122 = arith.constant dense<0.000000e+00> : vector<8xf32>
    %293 = vector.multi_reduction <add>, %292, %cst_122 [1] : vector<8x32xf32> to vector<8xf32>
    %294 = vector.shape_cast %293 : vector<8xf32> to vector<8x1xf32>
    %cst_123 = arith.constant 3.200000e+01 : f32
    %295 = vector.broadcast %cst_123 : f32 to vector<8x1xf32>
    %296 = arith.divf %294, %295 : vector<8x1xf32>
    %cst_124 = arith.constant 9.99999974E-6 : f32
    %297 = vector.broadcast %cst_124 : f32 to vector<8x1xf32>
    %298 = arith.addf %296, %297 : vector<8x1xf32>
    %299 = math.rsqrt %298 : vector<8x1xf32>
    %300 = vector.broadcast %299 : vector<8x1xf32> to vector<8x32xf32>
    %301 = arith.mulf %291, %300 : vector<8x32xf32>
    %c0_125 = arith.constant 0 : index
    %c0_126 = arith.constant 0 : index
    %302 = vector.load %arg21[%c0_125, %c0_126] : memref<1x32xf32, #tpu.memory_space<vmem>>, vector<1x32xf32>
    %303 = vector.broadcast %302 : vector<1x32xf32> to vector<8x32xf32>
    %304 = arith.mulf %301, %303 : vector<8x32xf32>
    %c0_127 = arith.constant 0 : index
    %c0_128 = arith.constant 0 : index
    %305 = vector.load %arg22[%c0_127, %c0_128] : memref<1x32xf32, #tpu.memory_space<vmem>>, vector<1x32xf32>
    %306 = vector.broadcast %305 : vector<1x32xf32> to vector<8x32xf32>
    %307 = arith.addf %304, %306 : vector<8x32xf32>
    %c0_129 = arith.constant 0 : index
    %c0_130 = arith.constant 0 : index
    %308 = vector.load %arg23[%c0_129, %c0_130] : memref<32x64xf32, #tpu.memory_space<vmem>>, vector<32x64xf32>
    %cst_131 = arith.constant dense<0.000000e+00> : vector<8x64xf32>
    %309 = tpu.matmul %307, %308, %cst_131 {dimension_numbers = #tpu.dot_dimension_numbers<[1], [0], [0], [1], [0, 0, 1, 1], [], []>} : vector<8x32xf32>, vector<32x64xf32>, vector<8x64xf32> -> vector<8x64xf32>
    %c0_132 = arith.constant 0 : index
    %c0_133 = arith.constant 0 : index
    %310 = vector.load %arg24[%c0_132, %c0_133] : memref<1x64xf32, #tpu.memory_space<vmem>>, vector<1x64xf32>
    %311 = vector.broadcast %310 : vector<1x64xf32> to vector<8x64xf32>
    %312 = arith.addf %309, %311 : vector<8x64xf32>
    %313 = arith.mulf %312, %312 : vector<8x64xf32>
    %314 = arith.mulf %312, %313 : vector<8x64xf32>
    %cst_134 = arith.constant 4.471500e-02 : f32
    %315 = vector.broadcast %cst_134 : f32 to vector<8x64xf32>
    %316 = arith.mulf %315, %314 : vector<8x64xf32>
    %317 = arith.addf %312, %316 : vector<8x64xf32>
    %cst_135 = arith.constant 0.797884583 : f32
    %318 = vector.broadcast %cst_135 : f32 to vector<8x64xf32>
    %319 = arith.mulf %318, %317 : vector<8x64xf32>
    %320 = math.tanh %319 : vector<8x64xf32>
    %cst_136 = arith.constant 1.000000e+00 : f32
    %321 = vector.broadcast %cst_136 : f32 to vector<8x64xf32>
    %322 = arith.addf %321, %320 : vector<8x64xf32>
    %cst_137 = arith.constant 5.000000e-01 : f32
    %323 = vector.broadcast %cst_137 : f32 to vector<8x64xf32>
    %324 = arith.mulf %323, %322 : vector<8x64xf32>
    %325 = arith.mulf %312, %324 : vector<8x64xf32>
    %c0_138 = arith.constant 0 : index
    %c0_139 = arith.constant 0 : index
    %326 = vector.load %arg25[%c0_138, %c0_139] : memref<64x32xf32, #tpu.memory_space<vmem>>, vector<64x32xf32>
    %cst_140 = arith.constant dense<0.000000e+00> : vector<8x32xf32>
    %327 = tpu.matmul %325, %326, %cst_140 {dimension_numbers = #tpu.dot_dimension_numbers<[1], [0], [0], [1], [0, 0, 1, 1], [], []>} : vector<8x64xf32>, vector<64x32xf32>, vector<8x32xf32> -> vector<8x32xf32>
    %c0_141 = arith.constant 0 : index
    %c0_142 = arith.constant 0 : index
    %328 = vector.load %arg26[%c0_141, %c0_142] : memref<1x32xf32, #tpu.memory_space<vmem>>, vector<1x32xf32>
    %329 = vector.broadcast %328 : vector<1x32xf32> to vector<8x32xf32>
    %330 = arith.addf %327, %329 : vector<8x32xf32>
    %331 = arith.addf %330, %307 : vector<8x32xf32>
    %cst_143 = arith.constant dense<0.000000e+00> : vector<8xf32>
    %332 = vector.multi_reduction <add>, %331, %cst_143 [1] : vector<8x32xf32> to vector<8xf32>
    %333 = vector.shape_cast %332 : vector<8xf32> to vector<8x1xf32>
    %cst_144 = arith.constant 3.200000e+01 : f32
    %334 = vector.broadcast %cst_144 : f32 to vector<8x1xf32>
    %335 = arith.divf %333, %334 : vector<8x1xf32>
    %336 = vector.broadcast %335 : vector<8x1xf32> to vector<8x32xf32>
    %337 = arith.subf %331, %336 : vector<8x32xf32>
    %338 = arith.mulf %337, %337 : vector<8x32xf32>
    %cst_145 = arith.constant dense<0.000000e+00> : vector<8xf32>
    %339 = vector.multi_reduction <add>, %338, %cst_145 [1] : vector<8x32xf32> to vector<8xf32>
    %340 = vector.shape_cast %339 : vector<8xf32> to vector<8x1xf32>
    %cst_146 = arith.constant 3.200000e+01 : f32
    %341 = vector.broadcast %cst_146 : f32 to vector<8x1xf32>
    %342 = arith.divf %340, %341 : vector<8x1xf32>
    %cst_147 = arith.constant 9.99999974E-6 : f32
    %343 = vector.broadcast %cst_147 : f32 to vector<8x1xf32>
    %344 = arith.addf %342, %343 : vector<8x1xf32>
    %345 = math.rsqrt %344 : vector<8x1xf32>
    %346 = vector.broadcast %345 : vector<8x1xf32> to vector<8x32xf32>
    %347 = arith.mulf %337, %346 : vector<8x32xf32>
    %c0_148 = arith.constant 0 : index
    %c0_149 = arith.constant 0 : index
    %348 = vector.load %arg27[%c0_148, %c0_149] : memref<1x32xf32, #tpu.memory_space<vmem>>, vector<1x32xf32>
    %349 = vector.broadcast %348 : vector<1x32xf32> to vector<8x32xf32>
    %350 = arith.mulf %347, %349 : vector<8x32xf32>
    %c0_150 = arith.constant 0 : index
    %c0_151 = arith.constant 0 : index
    %351 = vector.load %arg28[%c0_150, %c0_151] : memref<1x32xf32, #tpu.memory_space<vmem>>, vector<1x32xf32>
    %352 = vector.broadcast %351 : vector<1x32xf32> to vector<8x32xf32>
    %353 = arith.addf %350, %352 : vector<8x32xf32>
    %354 = vector.extract_strided_slice %353 {offsets = [0, 0], sizes = [1, 32], strides = [1, 1]} : vector<8x32xf32> to vector<1x32xf32>
    %c0_152 = arith.constant 0 : index
    %c0_153 = arith.constant 0 : index
    %355 = vector.load %arg29[%c0_152, %c0_153] : memref<32x128xf32, #tpu.memory_space<vmem>>, vector<32x128xf32>
    %cst_154 = arith.constant dense<0.000000e+00> : vector<1x128xf32>
    %356 = tpu.matmul %354, %355, %cst_154 {dimension_numbers = #tpu.dot_dimension_numbers<[1], [0], [0], [1], [0, 0, 1, 1], [], []>} : vector<1x32xf32>, vector<32x128xf32>, vector<1x128xf32> -> vector<1x128xf32>
    %c0_155 = arith.constant 0 : index
    %c0_156 = arith.constant 0 : index
    %357 = vector.load %arg30[%c0_155, %c0_156] : memref<1x128xf32, #tpu.memory_space<vmem>>, vector<1x128xf32>
    %358 = arith.addf %356, %357 : vector<1x128xf32>
    %c0_157 = arith.constant 0 : index
    %c0_158 = arith.constant 0 : index
    %c0_159 = arith.constant 0 : index
    %359 = vector.load %arg31[%c0_157, %c0_158, %c0_159] : memref<1x1x128xf32, #tpu.memory_space<vmem>>, vector<1x1x128xf32>
    %360 = vector.shape_cast %359 : vector<1x1x128xf32> to vector<1x128xf32>
    %361 = vector.shape_cast %358 : vector<1x128xf32> to vector<1x1x128xf32>
    tpu.vector_store %arg31[%c0_157, %c0_158, %c0_159], %361 {strides = array<i32>} : memref<1x1x128xf32, #tpu.memory_space<vmem>>, vector<1x1x128xf32>,
    return
  }
  func.func @transform_0(%arg0: i32) -> (i32, i32, i32) {
    %c0_i32 = arith.constant 0 : i32
    %c0_i32_0 = arith.constant 0 : i32
    %c0_i32_1 = arith.constant 0 : i32
    return %arg0, %c0_i32, %c0_i32_0 : i32, i32, i32
  }
  func.func @transform_1(%arg0: i32) -> (i32, i32, i32) {
    %c0_i32 = arith.constant 0 : i32
    %c0_i32_0 = arith.constant 0 : i32
    %c0_i32_1 = arith.constant 0 : i32
    return %arg0, %c0_i32, %c0_i32_0 : i32, i32, i32
  }
  func.func @transform_2(%arg0: i32) -> (i32, i32) {
    %c0_i32 = arith.constant 0 : i32
    %c0_i32_0 = arith.constant 0 : i32
    %c0_i32_1 = arith.constant 0 : i32
    return %c0_i32, %c0_i32_0 : i32, i32
  }
  func.func @transform_3(%arg0: i32) -> (i32, i32) {
    %c0_i32 = arith.constant 0 : i32
    %c0_i32_0 = arith.constant 0 : i32
    %c0_i32_1 = arith.constant 0 : i32
    return %c0_i32, %c0_i32_0 : i32, i32
  }
  func.func @transform_4(%arg0: i32) -> (i32, i32) {
    %c0_i32 = arith.constant 0 : i32
    %c0_i32_0 = arith.constant 0 : i32
    %c0_i32_1 = arith.constant 0 : i32
    return %c0_i32, %c0_i32_0 : i32, i32
  }
  func.func @transform_5(%arg0: i32) -> (i32, i32) {
    %c0_i32 = arith.constant 0 : i32
    %c0_i32_0 = arith.constant 0 : i32
    %c0_i32_1 = arith.constant 0 : i32
    return %c0_i32, %c0_i32_0 : i32, i32
  }
  func.func @transform_6(%arg0: i32) -> (i32, i32) {
    %c0_i32 = arith.constant 0 : i32
    %c0_i32_0 = arith.constant 0 : i32
    %c0_i32_1 = arith.constant 0 : i32
    return %c0_i32, %c0_i32_0 : i32, i32
  }
  func.func @transform_7(%arg0: i32) -> (i32, i32) {
    %c0_i32 = arith.constant 0 : i32
    %c0_i32_0 = arith.constant 0 : i32
    %c0_i32_1 = arith.constant 0 : i32
    return %c0_i32, %c0_i32_0 : i32, i32
  }
  func.func @transform_8(%arg0: i32) -> (i32, i32) {
    %c0_i32 = arith.constant 0 : i32
    %c0_i32_0 = arith.constant 0 : i32
    %c0_i32_1 = arith.constant 0 : i32
    return %c0_i32, %c0_i32_0 : i32, i32
  }
  func.func @transform_9(%arg0: i32) -> (i32, i32) {
    %c0_i32 = arith.constant 0 : i32
    %c0_i32_0 = arith.constant 0 : i32
    %c0_i32_1 = arith.constant 0 : i32
    return %c0_i32, %c0_i32_0 : i32, i32
  }
  func.func @transform_10(%arg0: i32) -> (i32, i32) {
    %c0_i32 = arith.constant 0 : i32
    %c0_i32_0 = arith.constant 0 : i32
    %c0_i32_1 = arith.constant 0 : i32
    return %c0_i32, %c0_i32_0 : i32, i32
  }
  func.func @transform_11(%arg0: i32) -> (i32, i32) {
    %c0_i32 = arith.constant 0 : i32
    %c0_i32_0 = arith.constant 0 : i32
    %c0_i32_1 = arith.constant 0 : i32
    return %c0_i32, %c0_i32_0 : i32, i32
  }
  func.func @transform_12(%arg0: i32) -> (i32, i32) {
    %c0_i32 = arith.constant 0 : i32
    %c0_i32_0 = arith.constant 0 : i32
    %c0_i32_1 = arith.constant 0 : i32
    return %c0_i32, %c0_i32_0 : i32, i32
  }
  func.func @transform_13(%arg0: i32) -> (i32, i32) {
    %c0_i32 = arith.constant 0 : i32
    %c0_i32_0 = arith.constant 0 : i32
    %c0_i32_1 = arith.constant 0 : i32
    return %c0_i32, %c0_i32_0 : i32, i32
  }
  func.func @transform_14(%arg0: i32) -> (i32, i32) {
    %c0_i32 = arith.constant 0 : i32
    %c0_i32_0 = arith.constant 0 : i32
    %c0_i32_1 = arith.constant 0 : i32
    return %c0_i32, %c0_i32_0 : i32, i32
  }
  func.func @transform_15(%arg0: i32) -> (i32, i32) {
    %c0_i32 = arith.constant 0 : i32
    %c0_i32_0 = arith.constant 0 : i32
    %c0_i32_1 = arith.constant 0 : i32
    return %c0_i32, %c0_i32_0 : i32, i32
  }
  func.func @transform_16(%arg0: i32) -> (i32, i32) {
    %c0_i32 = arith.constant 0 : i32
    %c0_i32_0 = arith.constant 0 : i32
    %c0_i32_1 = arith.constant 0 : i32
    return %c0_i32, %c0_i32_0 : i32, i32
  }
  func.func @transform_17(%arg0: i32) -> (i32, i32) {
    %c0_i32 = arith.constant 0 : i32
    %c0_i32_0 = arith.constant 0 : i32
    %c0_i32_1 = arith.constant 0 : i32
    return %c0_i32, %c0_i32_0 : i32, i32
  }
  func.func @transform_18(%arg0: i32) -> (i32, i32) {
    %c0_i32 = arith.constant 0 : i32
    %c0_i32_0 = arith.constant 0 : i32
    %c0_i32_1 = arith.constant 0 : i32
    return %c0_i32, %c0_i32_0 : i32, i32
  }
  func.func @transform_19(%arg0: i32) -> (i32, i32) {
    %c0_i32 = arith.constant 0 : i32
    %c0_i32_0 = arith.constant 0 : i32
    %c0_i32_1 = arith.constant 0 : i32
    return %c0_i32, %c0_i32_0 : i32, i32
  }
  func.func @transform_20(%arg0: i32) -> (i32, i32) {
    %c0_i32 = arith.constant 0 : i32
    %c0_i32_0 = arith.constant 0 : i32
    %c0_i32_1 = arith.constant 0 : i32
    return %c0_i32, %c0_i32_0 : i32, i32
  }
  func.func @transform_21(%arg0: i32) -> (i32, i32) {
    %c0_i32 = arith.constant 0 : i32
    %c0_i32_0 = arith.constant 0 : i32
    %c0_i32_1 = arith.constant 0 : i32
    return %c0_i32, %c0_i32_0 : i32, i32
  }
  func.func @transform_22(%arg0: i32) -> (i32, i32) {
    %c0_i32 = arith.constant 0 : i32
    %c0_i32_0 = arith.constant 0 : i32
    %c0_i32_1 = arith.constant 0 : i32
    return %c0_i32, %c0_i32_0 : i32, i32
  }
  func.func @transform_23(%arg0: i32) -> (i32, i32) {
    %c0_i32 = arith.constant 0 : i32
    %c0_i32_0 = arith.constant 0 : i32
    %c0_i32_1 = arith.constant 0 : i32
    return %c0_i32, %c0_i32_0 : i32, i32
  }
  func.func @transform_24(%arg0: i32) -> (i32, i32) {
    %c0_i32 = arith.constant 0 : i32
    %c0_i32_0 = arith.constant 0 : i32
    %c0_i32_1 = arith.constant 0 : i32
    return %c0_i32, %c0_i32_0 : i32, i32
  }
  func.func @transform_25(%arg0: i32) -> (i32, i32) {
    %c0_i32 = arith.constant 0 : i32
    %c0_i32_0 = arith.constant 0 : i32
    %c0_i32_1 = arith.constant 0 : i32
    return %c0_i32, %c0_i32_0 : i32, i32
  }
  func.func @transform_26(%arg0: i32) -> (i32, i32) {
    %c0_i32 = arith.constant 0 : i32
    %c0_i32_0 = arith.constant 0 : i32
    %c0_i32_1 = arith.constant 0 : i32
    return %c0_i32, %c0_i32_0 : i32, i32
  }
  func.func @transform_27(%arg0: i32) -> (i32, i32) {
    %c0_i32 = arith.constant 0 : i32
    %c0_i32_0 = arith.constant 0 : i32
    %c0_i32_1 = arith.constant 0 : i32
    return %c0_i32, %c0_i32_0 : i32, i32
  }
  func.func @transform_28(%arg0: i32) -> (i32, i32) {
    %c0_i32 = arith.constant 0 : i32
    %c0_i32_0 = arith.constant 0 : i32
    %c0_i32_1 = arith.constant 0 : i32
    return %c0_i32, %c0_i32_0 : i32, i32
  }
  func.func @transform_29(%arg0: i32) -> (i32, i32) {
    %c0_i32 = arith.constant 0 : i32
    %c0_i32_0 = arith.constant 0 : i32
    %c0_i32_1 = arith.constant 0 : i32
    return %c0_i32, %c0_i32_0 : i32, i32
  }
  func.func @transform_30(%arg0: i32) -> (i32, i32, i32) {
    %c0_i32 = arith.constant 0 : i32
    %c0_i32_0 = arith.constant 0 : i32
    %c0_i32_1 = arith.constant 0 : i32
    return %arg0, %c0_i32, %c0_i32_0 : i32, i32, i32
  }
}

</mosaic_0001>

<bundles_post_ra>
// kernel: tpu_custom_call.1
= control target key start
LH: loop header
LB: loop body
LE: loop exit
PB: predicated region body
PF: predicated region fallthrough
CT: control target
= control target key end

     0   :  { %s5486_s6 = smov 1   ;;  %s5487_s10 = smov 2   ;;  %s6399_s0 = inlined_call_operand.smem [shape: u32[31], index: -1, kind: input, shape index: {}] }
   0x1   :  { %s5556_s5 = sld [smem:[%s6399_s0]]   ;;  %s5488_s14 = smov 3  }
   0x2   :  { %s5561_s9 = sld [smem:[%s6399_s0 + %s5486_s6]]   ;;  %s5489_s18 = smov 4  }
   0x3   :  { %s5566_s13 = sld [smem:[%s6399_s0 + %s5487_s10]]   ;;  %s5490_s22 = smov 5  }
   0x4   :  { %s5571_s17 = sld [smem:[%s6399_s0 + %s5488_s14]]   ;;  %s5491_s26 = smov 6  }
   0x5   :  { %s5576_s21 = sld [smem:[%s6399_s0 + %s5489_s18]]   ;;  %s5492_s30 = smov 7  }
   0x6   :  { %s5581_s25 = sld [smem:[%s6399_s0 + %s5490_s22]]   ;;  %s5493_s4 = smov 8  }
   0x7   :  { %6433 = sst [smem:[#allocation41_spill]] %s5556_s5  ;;  %s5494_s10 = smov 9  }
   0x8   :  { %6434 = sst [smem:[#allocation42_spill]] %s5561_s9  ;;  %s5495_s15 = smov 10  }
   0x9   :  { %6435 = sst [smem:[#allocation43_spill]] %s5566_s13  ;;  %s5496_s20 = smov 11  }
   0xa   :  { %6436 = sst [smem:[#allocation44_spill]] %s5571_s17  ;;  %s5498_s1 = smov 13  }
   0xb   :  { %6437 = sst [smem:[#allocation45_spill]] %s5576_s21  ;;  %s5499_s7 = smov 14  }
   0xc   :  { %s5586_s29 = sld [smem:[%s6399_s0 + %s5491_s26]]   ;;  %s5497_s26 = smov 12  }
   0xd   :  { %s5591_s3 = sld [smem:[%s6399_s0 + %s5492_s30]]   ;;  %s5501_s22 = smov 16  }
   0xe   :  { %s5596_s8 = sld [smem:[%s6399_s0 + %s5493_s4]]   ;;  %s5502_s28 = smov 17  }
   0xf   :  { %s5601_s14 = sld [smem:[%s6399_s0 + %s5494_s10]]  }
  0x10   :  { %s5606_s19 = sld [smem:[%s6399_s0 + %s5495_s15]]   ;;  %s5500_s15 = smov 15  }
  0x11   :  { %s5611_s24 = sld [smem:[%s6399_s0 + %s5496_s20]]  }
  0x12   :  { %6438 = sst [smem:[#allocation46_spill]] %s5586_s29 }
  0x13   :  { %6439 = sst [smem:[#allocation47_spill]] %s5591_s3 }
  0x14   :  { %6440 = sst [smem:[#allocation48_spill]] %s5596_s8 }
  0x15   :  { %6441 = sst [smem:[#allocation49_spill]] %s5601_s14 }
  0x16   :  { %6442 = sst [smem:[#allocation50_spill]] %s5606_s19 }
  0x17   :  { %s5616_s30 = sld [smem:[%s6399_s0 + %s5497_s26]]  }
  0x18   :  { %s5621_s6 = sld [smem:[%s6399_s0 + %s5498_s1]]  }
  0x19   :  { %s5626_s12 = sld [smem:[%s6399_s0 + %s5499_s7]]   ;;  %s5503_s7 = smov 18  }
  0x1a   :  { %s5631_s20 = sld [smem:[%s6399_s0 + %s5500_s15]]   ;;  %s5504_s15 = smov 19  }
  0x1b   :  { %s5636_s27 = sld [smem:[%s6399_s0 + %s5501_s22]]   ;;  %s5505_s22 = smov 20  }
  0x1c   :  { %s5641_s4 = sld [smem:[%s6399_s0 + %s5502_s28]]   ;;  %s5506_s28 = smov 21  }
  0x1d   :  { %6443 = sst [smem:[#allocation51_spill]] %s5616_s30 }
  0x1e   :  { %6444 = sst [smem:[#allocation52_spill]] %s5621_s6 }
  0x1f   :  { %6445 = sst [smem:[#allocation53_spill]] %s5626_s12 }
  0x20   :  { %6446 = sst [smem:[#allocation54_spill]] %s5631_s20 }
  0x21   :  { %6447 = sst [smem:[#allocation55_spill]] %s5636_s27 }
  0x22   :  { %6448 = sst [smem:[#allocation56_spill]] %s5641_s4 }
  0x23   :  { %s5646_s30 = sld [smem:[%s6399_s0 + %s5503_s7]]   ;;  %s5507_s7 = smov 22  }
  0x24   :  { %s5651_s19 = sld [smem:[%s6399_s0 + %s5504_s15]]   ;;  %s5508_s15 = smov 23  }
  0x25   :  { %s5656_s27 = sld [smem:[%s6399_s0 + %s5505_s22]]   ;;  %s5509_s22 = smov 24  }
  0x26   :  { %s5661_s29 = sld [smem:[%s6399_s0 + %s5506_s28]]   ;;  %s5510_s28 = smov 25  }
  0x27   :  { %s5681_s21 = sld [smem:[%s6399_s0 + %s5510_s28]]   ;;  %s5514_s28 = smov 29  }
  0x28   :  { %s5701_s5 = sld [smem:[%s6399_s0 + %s5514_s28]]  }
  0x29   :  { %6449 = sst [smem:[#allocation57_spill]] %s5646_s30 }
  0x2a   :  { %6450 = sst [smem:[#allocation58_spill]] %s5651_s19 }
  0x2b   :  { %6451 = sst [smem:[#allocation59_spill]] %s5656_s27 }
  0x2c   :  { %s5666_s30 = sld [smem:[%s6399_s0 + %s5507_s7]]   ;;  %s5511_s7 = smov 26  }
  0x2d   :  { %s5671_s19 = sld [smem:[%s6399_s0 + %s5508_s15]]   ;;  %s5512_s15 = smov 27  }
  0x2e   :  { %s5676_s27 = sld [smem:[%s6399_s0 + %s5509_s22]]   ;;  %s5513_s22 = smov 28  }
  0x2f   :  { %6455 = sst [smem:[#allocation63_spill]] %s5681_s21 }
  0x30   :  { %s5691_s9 = sld [smem:[%s6399_s0 + %s5512_s15]]  }
  0x31   :  { %6457 = sst [smem:[#allocation65_spill]] %s5701_s5 }
  0x32   :  { %6452 = sst [smem:[#allocation60_spill]] %s5666_s30 }
  0x33   :  { %6453 = sst [smem:[#allocation61_spill]] %s5671_s19 }
  0x34   :  { %6454 = sst [smem:[#allocation62_spill]] %s5676_s27 }
  0x35   :  { %s5686_s30 = sld [smem:[%s6399_s0 + %s5511_s7]]   ;;  %s5515_s7 = smov 30  }
  0x36   :  { %s5696_s27 = sld [smem:[%s6399_s0 + %s5513_s22]]  }
  0x3b   :  { %6456 = sst [smem:[#allocation64_spill]] %s5686_s30 }
  0x3c   :  { %s5706_s30 = sld [smem:[%s6399_s0 + %s5515_s7]]  }
  0x42   :  { %6458 = sst [smem:[#allocation66_spill]] %s5706_s30 }
  0x43   :  { %66 = vsyncpa [#allocation3], 0 }
  0x44   :  { %68 = vsyncpa [#allocation3 + $0x1], 0 }
  0x45   :  { %69 = vsyncpa [#allocation6], 0 }
  0x46   :  { %71 = vsyncpa [#allocation6 + $0x1], 0 }
  0x47   :  { %72 = vsyncpa [#allocation9], 0 }
  0x48   :  { %73 = vsyncpa [#allocation12], 0 }
  0x49   :  { %74 = vsyncpa [#allocation15], 0 }
  0x4a   :  { %75 = vsyncpa [#allocation18], 0 }
  0x4b   :  { %76 = vsyncpa [#allocation21], 0 }
  0x4c   :  { %77 = vsyncpa [#allocation24], 0 }
  0x4d   :  { %78 = vsyncpa [#allocation27], 0 }
  0x4e   :  { %79 = vsyncpa [#allocation4], 0 }
  0x4f   :  { %81 = vsyncpa [#allocation4 + $0x1], 0  ;;  %s5708_s15 = smov 0   ;;  %s5710_s16 = smov 0  }
  0x50   :  { %s5712_s18 = smov 0   ;;  %s5714_s0 = smov 0  }
  0x51 LB: > { %s6459_s21 = sld [smem:[#allocation63_spill]]  ;;  %s6460_s20 = sld [smem:[#allocation54_spill]]  ;;  %s5480_s18 = sphi %s5712_s18, %s6519_s18   ;;  %s5476_s16 = sphi %s5710_s16, %s6518_s16   ;;  %s5472_s15 = sphi %s5708_s15, %s6517_s15   ;;  %s5484_s0 = sphi %s5714_s0, %s6520_s0  }
  0x52   : > { %s6461_s19 = sld [smem:[#allocation61_spill]]  ;;  %s6462_s17 = sld [smem:[#allocation44_spill]] }
  0x53   : > { %s6463_s14 = sld [smem:[#allocation49_spill]]  ;;  %s6464_s13 = sld [smem:[#allocation43_spill]] }
  0x54   : > { %s6465_s12 = sld [smem:[#allocation53_spill]]  ;;  %s6466_s8 = sld [smem:[#allocation48_spill]] }
  0x55   : > { %s6467_s6 = sld [smem:[#allocation52_spill]]  ;;  %s6468_s4 = sld [smem:[#allocation56_spill]] }
  0x56   : > { %s6469_s3 = sld [smem:[#allocation47_spill]]  ;;  %s5516_s22 = smov [#allocation7]  }
  0x57   : > { %s771_s23 = sshll.u32 %s5516_s22, 4  ;;  %s5729_s26 = sadd.s32 4294967295, %s5484_s0   ;;  %s5734_s23 = int_to_ptr.vmem [resolvable:$true] %s771_s23 }
  0x58   : > { %p4154_p0 = scmp.ge.s32.totalorder %s5484_s0, 1  ;;  %p6412_p1 = scmp.eq.s32.totalorder %s5729_s26, 0 }
  0x59   : > { %p758_p2 = scmp.lt.s32.totalorder %s5484_s0, 3  ;;  %s5517_s1 = smov [#allocation8]  }
  0x5a   : > { %s782_s2 = sshll.u32 %s5517_s1, 4  ;;  %s5518_s7 = smov [#allocation11]   ;;  %s5743_s2 = int_to_ptr.vmem [resolvable:$true] %s782_s2 }
  0x5b   : > { %p5736_p3 = pnand %p4154_p0, %p758_p2  ;;  %s810_s10 = sshll.u32 %s5518_s7, 4  ;;  %s5751_s10 = int_to_ptr.vmem [resolvable:$true] %s810_s10 }
  0x5c   : > { %s5519_s22 = smov [#allocation14]   ;;  %s4902_s5 = scalar_lea.hbm %s6464_s13, 16 }
  0x5d   : > { %s6470_s28 = scalar_select %p5736_p3, 1, 0 }
  0x5e   : > { %p4676_p5 = pneg %p5736_p3  ;;  %s5753_s30 = sshll.u32 %s5519_s22, 4  ;;  %s833_s30 = int_to_ptr.vmem [resolvable:$true] %s5753_s30 }
  0x5f   : > { %p4903_p7 = scmp.ne.s32.totalorder %s6464_s13, %s4902_s5  ;;  %p4909_p11 = scmp.lt.u32.totalorder %s4902_s5, %s6464_s13 }
  0x60   : > { %p5747_p6 = pnand %p4676_p5, %p6412_p1 }
  0x62   : > { %p5759_p8 = pneg %p5747_p6 }
  0x64   : > { %p4905_p9 = pnand %p5759_p8, %p4903_p7 }
  0x66   : > { %p4906_p10 = pneg %p4905_p9 }
  0x68   : > { %p4911_p12 = pnand %p4909_p11, %p4906_p10 }
  0x6a   : > { %4914 = shalt.err (!%p4911_p12)
}
  0x6b   : > { %s4915_s7 = scalar_lea.vmem %s5734_s23, 16  ;;  %s4922_s22 = scalar_lea.vmem %s5734_s23, 32 }
  0x6c   : > { %p4916_p13 = scmp.ne.s32.totalorder %s5734_s23, %s4915_s7  ;;  %p4923_p5 = scmp.lt.s32.totalorder %s5734_s23, %s5734_s23 }
  0x6d   : > { %p4924_p4 = scmp.lt.s32.totalorder %s4922_s22, %s4915_s7 }
  0x6e   : > { %p4918_p0 = pnand %p4916_p13, %p5759_p8 }
  0x6f   : > { %p4925_p1 = por %p4924_p4, %p4923_p5 }
  0x70   : > { %p4919_p2 = pneg %p4918_p0 }
  0x72   : > { %p4926_p7 = pnand %p4925_p1, %p4919_p2 }
  0x74   : > { %4929 = shalt.err (!%p4926_p7)
}
  0x75   : > { %4679 = dma.hbm_to_vmem [thread:$0]  (!%p5747_p6), %s6464_s13, 16, %s5734_s23, [#allocation6]  }
  0x76   : > { %s4930_s5 = scalar_lea.hbm %s6462_s17, 16 }
  0x77   : > { %p4931_p9 = scmp.ne.s32.totalorder %s6462_s17, %s4930_s5  ;;  %p4937_p12 = scmp.lt.u32.totalorder %s4930_s5, %s6462_s17 }
  0x79   : > { %p4933_p10 = pnand %p4931_p9, %p5759_p8 }
  0x7b   : > { %p4934_p11 = pneg %p4933_p10 }
  0x7d   : > { %p4939_p13 = pnand %p4937_p12, %p4934_p11 }
  0x7f   : > { %4942 = shalt.err (!%p4939_p13)
}
  0x80   : > { %s4943_s7 = scalar_lea.vmem %s5743_s2, 16  ;;  %s4950_s22 = scalar_lea.vmem %s5743_s2, 32 }
  0x81   : > { %p4944_p1 = scmp.ne.s32.totalorder %s5743_s2, %s4943_s7  ;;  %p4951_p2 = scmp.lt.s32.totalorder %s5743_s2, %s5743_s2 }
  0x82   : > { %p4952_p5 = scmp.lt.s32.totalorder %s4950_s22, %s4943_s7 }
  0x83   : > { %p4946_p4 = pnand %p4944_p1, %p5759_p8 }
  0x84   : > { %p4953_p7 = por %p4952_p5, %p4951_p2 }
  0x85   : > { %p4947_p0 = pneg %p4946_p4 }
  0x87   : > { %p4954_p9 = pnand %p4953_p7, %p4947_p0 }
  0x89   : > { %4957 = shalt.err (!%p4954_p9)
}
  0x8a   : > { %4682 = dma.hbm_to_vmem [thread:$0]  (!%p5747_p6), %s6462_s17, 16, %s5743_s2, [#allocation9]  }
  0x8b   : > { %s4958_s23 = scalar_lea.hbm %s6469_s3, 16 }
  0x8c   : > { %p4959_p10 = scmp.ne.s32.totalorder %s6469_s3, %s4958_s23  ;;  %p4965_p13 = scmp.lt.u32.totalorder %s4958_s23, %s6469_s3 }
  0x8e   : > { %p4961_p11 = pnand %p4959_p10, %p5759_p8 }
  0x90   : > { %p4962_p12 = pneg %p4961_p11 }
  0x92   : > { %p4967_p1 = pnand %p4965_p13, %p4962_p12 }
  0x94   : > { %4970 = shalt.err (!%p4967_p1)
}
  0x95   : > { %s4971_s5 = scalar_lea.vmem %s5751_s10, 16  ;;  %s4978_s7 = scalar_lea.vmem %s5751_s10, 32 }
  0x96   : > { %p4972_p4 = scmp.ne.s32.totalorder %s5751_s10, %s4971_s5  ;;  %p4979_p5 = scmp.lt.s32.totalorder %s5751_s10, %s5751_s10 }
  0x97   : > { %p4980_p7 = scmp.lt.s32.totalorder %s4978_s7, %s4971_s5 }
  0x98   : > { %p4974_p0 = pnand %p4972_p4, %p5759_p8 }
  0x99   : > { %p4981_p9 = por %p4980_p7, %p4979_p5 }
  0x9a   : > { %p4975_p2 = pneg %p4974_p0 }
  0x9c   : > { %p4982_p10 = pnand %p4981_p9, %p4975_p2 }
  0x9e   : > { %4985 = shalt.err (!%p4982_p10)
}
  0x9f   : > { %4688 = dma.hbm_to_vmem [thread:$0]  (!%p5747_p6), %s6469_s3, 16, %s5751_s10, [#allocation12]  }
  0xa0   : > { %s5520_s2 = smov [#allocation17]   ;;  %s4986_s23 = scalar_lea.hbm %s6463_s14, 16 }
  0xa1   : > { %s860_s22 = sshll.u32 %s5520_s2, 4  ;;  %p4987_p11 = scmp.ne.s32.totalorder %s6463_s14, %s4986_s23  ;;  %s861_s22 = int_to_ptr.vmem [resolvable:$true] %s860_s22 }
  0xa2   : > { %p4993_p1 = scmp.lt.u32.totalorder %s4986_s23, %s6463_s14 }
  0xa3   : > { %p4989_p12 = pnand %p4987_p11, %p5759_p8 }
  0xa5   : > { %p4990_p13 = pneg %p4989_p12 }
  0xa7   : > { %p4995_p4 = pnand %p4993_p1, %p4990_p13 }
  0xa9   : > { %4998 = shalt.err (!%p4995_p4)
}
  0xaa   : > { %s4999_s5 = scalar_lea.vmem %s833_s30, 16  ;;  %s5006_s7 = scalar_lea.vmem %s833_s30, 32 }
  0xab   : > { %p5000_p0 = scmp.ne.s32.totalorder %s833_s30, %s4999_s5  ;;  %p5007_p7 = scmp.lt.s32.totalorder %s833_s30, %s833_s30 }
  0xac   : > { %p5008_p9 = scmp.lt.s32.totalorder %s5006_s7, %s4999_s5 }
  0xad   : > { %p5002_p2 = pnand %p5000_p0, %p5759_p8 }
  0xae   : > { %p5009_p10 = por %p5008_p9, %p5007_p7 }
  0xaf   : > { %p5003_p5 = pneg %p5002_p2 }
  0xb1   : > { %p5010_p3 = pnand %p5009_p10, %p5003_p5 }
  0xb3   : > { %5013 = shalt.err (!%p5010_p3)
}
  0xb4   : > { %4694 = dma.hbm_to_vmem [thread:$0]  (!%p5747_p6), %s6463_s14, 16, %s833_s30, [#allocation15]  }
  0xb5   : > { %s5014_s10 = scalar_lea.hbm %s6467_s6, 16 }
  0xb6   : > { %p5015_p11 = scmp.ne.s32.totalorder %s6467_s6, %s5014_s10  ;;  %p5021_p1 = scmp.lt.u32.totalorder %s5014_s10, %s6467_s6 }
  0xb8   : > { %p5017_p12 = pnand %p5015_p11, %p5759_p8 }
  0xba   : > { %p5018_p13 = pneg %p5017_p12 }
  0xbc   : > { %p5023_p4 = pnand %p5021_p1, %p5018_p13 }
  0xbe   : > { %5026 = shalt.err (!%p5023_p4)
}
  0xbf   : > { %s5027_s2 = scalar_lea.vmem %s861_s22, 16  ;;  %s5034_s23 = scalar_lea.vmem %s861_s22, 32 }
  0xc0   : > { %p5028_p3 = scmp.ne.s32.totalorder %s861_s22, %s5027_s2  ;;  %p5035_p5 = scmp.lt.s32.totalorder %s861_s22, %s861_s22 }
  0xc1   : > { %p5036_p7 = scmp.lt.s32.totalorder %s5034_s23, %s5027_s2 }
  0xc2   : > { %p5030_p0 = pnand %p5028_p3, %p5759_p8 }
  0xc3   : > { %p5037_p9 = por %p5036_p7, %p5035_p5 }
  0xc4   : > { %p5031_p2 = pneg %p5030_p0 }
  0xc6   : > { %p5038_p10 = pnand %p5037_p9, %p5031_p2 }
  0xc8   : > { %5041 = shalt.err (!%p5038_p10)
}
  0xc9   : > { %4700 = dma.hbm_to_vmem [thread:$0]  (!%p5747_p6), %s6467_s6, 16, %s861_s22, [#allocation18]  }
  0xca   : > { %s5521_s30 = smov [#allocation20]   ;;  %s5522_s7 = smov [#allocation23]  }
  0xcb   : > { %s882_s5 = sshll.u32 %s5521_s30, 4  ;;  %s916_s10 = sshll.u32 %s5522_s7, 4  ;;  %s883_s5 = int_to_ptr.vmem [resolvable:$true] %s882_s5  ;;  %s917_s10 = int_to_ptr.vmem [resolvable:$true] %s916_s10 }
  0xcc   : > { %s5042_s3 = scalar_lea.hbm %s6460_s20, 16 }
  0xcd   : > { %p5043_p11 = scmp.ne.s32.totalorder %s6460_s20, %s5042_s3  ;;  %p5049_p1 = scmp.lt.u32.totalorder %s5042_s3, %s6460_s20 }
  0xcf   : > { %p5045_p12 = pnand %p5043_p11, %p5759_p8 }
  0xd1   : > { %p5046_p13 = pneg %p5045_p12 }
  0xd3   : > { %p5051_p4 = pnand %p5049_p1, %p5046_p13 }
  0xd5   : > { %5054 = shalt.err (!%p5051_p4)
}
  0xd6   : > { %s5055_s2 = scalar_lea.vmem %s883_s5, 16  ;;  %s5062_s22 = scalar_lea.vmem %s883_s5, 32 }
  0xd7   : > { %p5056_p3 = scmp.ne.s32.totalorder %s883_s5, %s5055_s2  ;;  %p5063_p5 = scmp.lt.s32.totalorder %s883_s5, %s883_s5 }
  0xd8   : > { %p5064_p7 = scmp.lt.s32.totalorder %s5062_s22, %s5055_s2 }
  0xd9   : > { %p5058_p0 = pnand %p5056_p3, %p5759_p8 }
  0xda   : > { %p5065_p9 = por %p5064_p7, %p5063_p5 }
  0xdb   : > { %p5059_p2 = pneg %p5058_p0 }
  0xdd   : > { %p5066_p10 = pnand %p5065_p9, %p5059_p2 }
  0xdf   : > { %5069 = shalt.err (!%p5066_p10)
}
  0xe0   : > { %4706 = dma.hbm_to_vmem [thread:$0]  (!%p5747_p6), %s6460_s20, 16, %s883_s5, [#allocation21]  }
  0xe1   : > { %s5070_s3 = scalar_lea.hbm %s5661_s29, 16 }
  0xe2   : > { %p5071_p11 = scmp.ne.s32.totalorder %s5661_s29, %s5070_s3  ;;  %p5077_p1 = scmp.lt.u32.totalorder %s5070_s3, %s5661_s29 }
  0xe4   : > { %p5073_p12 = pnand %p5071_p11, %p5759_p8 }
  0xe6   : > { %p5074_p13 = pneg %p5073_p12 }
  0xe8   : > { %p5079_p4 = pnand %p5077_p1, %p5074_p13 }
  0xea   : > { %5082 = shalt.err (!%p5079_p4)
}
  0xeb   : > { %s5083_s23 = scalar_lea.vmem %s917_s10, 16  ;;  %s5090_s30 = scalar_lea.vmem %s917_s10, 32 }
  0xec   : > { %p5084_p3 = scmp.ne.s32.totalorder %s917_s10, %s5083_s23  ;;  %p5091_p5 = scmp.lt.s32.totalorder %s917_s10, %s917_s10 }
  0xed   : > { %p5092_p7 = scmp.lt.s32.totalorder %s5090_s30, %s5083_s23 }
  0xee   : > { %p5086_p0 = pnand %p5084_p3, %p5759_p8 }
  0xef   : > { %p5093_p9 = por %p5092_p7, %p5091_p5 }
  0xf0   : > { %p5087_p2 = pneg %p5086_p0 }
  0xf2   : > { %p5094_p10 = pnand %p5093_p9, %p5087_p2 }
  0xf4   : > { %5097 = shalt.err (!%p5094_p10)
}
  0xf5   : > { %4712 = dma.hbm_to_vmem [thread:$0]  (!%p5747_p6), %s5661_s29, 16, %s917_s10, [#allocation24]  }
  0xf6   : > { %s5523_s5 = smov [#allocation26]   ;;  %s5524_s2 = smov [#allocation10]  }
  0xf7   : > { %s944_s7 = sshll.u32 %s5523_s5, 4  ;;  %s796_s22 = sshll.u32 %s5524_s2, 4  ;;  %s945_s7 = int_to_ptr.vmem [resolvable:$true] %s944_s7  ;;  %s797_s22 = int_to_ptr.vmem [resolvable:$true] %s796_s22 }
  0xf8   : > { %s5098_s3 = scalar_lea.hbm %s6459_s21, 16 }
  0xf9   : > { %p5099_p11 = scmp.ne.s32.totalorder %s6459_s21, %s5098_s3  ;;  %p5105_p1 = scmp.lt.u32.totalorder %s5098_s3, %s6459_s21 }
  0xfb   : > { %p5101_p12 = pnand %p5099_p11, %p5759_p8 }
  0xfd   : > { %p5102_p13 = pneg %p5101_p12 }
  0xff   : > { %p5107_p4 = pnand %p5105_p1, %p5102_p13 }
 0x101   : > { %5110 = shalt.err (!%p5107_p4)
}
 0x102   : > { %s5111_s23 = scalar_lea.vmem %s945_s7, 16  ;;  %s5118_s10 = scalar_lea.vmem %s945_s7, 32 }
 0x103   : > { %p5112_p3 = scmp.ne.s32.totalorder %s945_s7, %s5111_s23  ;;  %p5119_p5 = scmp.lt.s32.totalorder %s945_s7, %s945_s7 }
 0x104   : > { %p5120_p7 = scmp.lt.s32.totalorder %s5118_s10, %s5111_s23 }
 0x105   : > { %p5114_p0 = pnand %p5112_p3, %p5759_p8 }
 0x106   : > { %p5121_p9 = por %p5120_p7, %p5119_p5 }
 0x107   : > { %p5115_p2 = pneg %p5114_p0 }
 0x109   : > { %p5122_p10 = pnand %p5121_p9, %p5115_p2 }
 0x10b   : > { %5125 = shalt.err (!%p5122_p10)
}
 0x10c   : > { %4718 = dma.hbm_to_vmem [thread:$0]  (!%p5747_p6), %s6459_s21, 16, %s945_s7, [#allocation27]  }
 0x10d   : > { %s5126_s30 = scalar_lea.hbm %s5581_s25, 16 }
 0x10e   : > { %p5127_p11 = scmp.ne.s32.totalorder %s5581_s25, %s5126_s30  ;;  %p5133_p1 = scmp.lt.u32.totalorder %s5126_s30, %s5581_s25 }
 0x110   : > { %p5129_p12 = pnand %p5127_p11, %p5759_p8 }
 0x112   : > { %p5130_p13 = pneg %p5129_p12 }
 0x114   : > { %p5135_p4 = pnand %p5133_p1, %p5130_p13 }
 0x116   : > { %5138 = shalt.err (!%p5135_p4)
}
 0x117   : > { %s5139_s5 = scalar_lea.vmem %s797_s22, 16  ;;  %s5146_s2 = scalar_lea.vmem %s797_s22, 32 }
 0x118   : > { %p5140_p3 = scmp.ne.s32.totalorder %s797_s22, %s5139_s5  ;;  %p5147_p5 = scmp.lt.s32.totalorder %s797_s22, %s797_s22 }
 0x119   : > { %p5148_p7 = scmp.lt.s32.totalorder %s5146_s2, %s5139_s5 }
 0x11a   : > { %p5142_p0 = pnand %p5140_p3, %p5759_p8 }
 0x11b   : > { %p5149_p9 = por %p5148_p7, %p5147_p5 }
 0x11c   : > { %p5143_p2 = pneg %p5142_p0 }
 0x11e   : > { %p5150_p10 = pnand %p5149_p9, %p5143_p2 }
 0x120   : > { %5153 = shalt.err (!%p5150_p10)
}
 0x121   : > { %4685 = dma.hbm_to_vmem [thread:$0]  (!%p5747_p6), %s5581_s25, 16, %s797_s22, [#allocation9]  }
 0x122   : > { %s5525_s7 = smov [#allocation13]   ;;  %s5526_s23 = smov [#allocation16]  }
 0x123   : > { %s821_s3 = sshll.u32 %s5525_s7, 4  ;;  %s846_s10 = sshll.u32 %s5526_s23, 4  ;;  %s822_s3 = int_to_ptr.vmem [resolvable:$true] %s821_s3  ;;  %s847_s10 = int_to_ptr.vmem [resolvable:$true] %s846_s10 }
 0x124   : > { %s5154_s30 = scalar_lea.hbm %s6466_s8, 16 }
 0x125   : > { %p5155_p11 = scmp.ne.s32.totalorder %s6466_s8, %s5154_s30  ;;  %p5161_p1 = scmp.lt.u32.totalorder %s5154_s30, %s6466_s8 }
 0x127   : > { %p5157_p12 = pnand %p5155_p11, %p5759_p8 }
 0x129   : > { %p5158_p13 = pneg %p5157_p12 }
 0x12b   : > { %p5163_p4 = pnand %p5161_p1, %p5158_p13 }
 0x12d   : > { %5166 = shalt.err (!%p5163_p4)
}
 0x12e   : > { %s5167_s5 = scalar_lea.vmem %s822_s3, 16  ;;  %s5174_s22 = scalar_lea.vmem %s822_s3, 32 }
 0x12f   : > { %p5168_p3 = scmp.ne.s32.totalorder %s822_s3, %s5167_s5  ;;  %p5175_p5 = scmp.lt.s32.totalorder %s822_s3, %s822_s3 }
 0x130   : > { %p5176_p7 = scmp.lt.s32.totalorder %s5174_s22, %s5167_s5 }
 0x131   : > { %p5170_p0 = pnand %p5168_p3, %p5759_p8 }
 0x132   : > { %p5177_p9 = por %p5176_p7, %p5175_p5 }
 0x133   : > { %p5171_p2 = pneg %p5170_p0 }
 0x135   : > { %p5178_p10 = pnand %p5177_p9, %p5171_p2 }
 0x137   : > { %5181 = shalt.err (!%p5178_p10)
}
 0x138   : > { %4691 = dma.hbm_to_vmem [thread:$0]  (!%p5747_p6), %s6466_s8, 16, %s822_s3, [#allocation12]  }
 0x139   : > { %s5182_s2 = scalar_lea.hbm %s5611_s24, 16 }
 0x13a   : > { %p5183_p11 = scmp.ne.s32.totalorder %s5611_s24, %s5182_s2  ;;  %p5189_p1 = scmp.lt.u32.totalorder %s5182_s2, %s5611_s24 }
 0x13c   : > { %p5185_p12 = pnand %p5183_p11, %p5759_p8 }
 0x13e   : > { %p5186_p13 = pneg %p5185_p12 }
 0x140   : > { %p5191_p4 = pnand %p5189_p1, %p5186_p13 }
 0x142   : > { %5194 = shalt.err (!%p5191_p4)
}
 0x143   : > { %s5195_s7 = scalar_lea.vmem %s847_s10, 16  ;;  %s5202_s23 = scalar_lea.vmem %s847_s10, 32 }
 0x144   : > { %p5196_p3 = scmp.ne.s32.totalorder %s847_s10, %s5195_s7  ;;  %p5203_p5 = scmp.lt.s32.totalorder %s847_s10, %s847_s10 }
 0x145   : > { %p5204_p7 = scmp.lt.s32.totalorder %s5202_s23, %s5195_s7 }
 0x146   : > { %p5198_p0 = pnand %p5196_p3, %p5759_p8 }
 0x147   : > { %p5205_p9 = por %p5204_p7, %p5203_p5 }
 0x148   : > { %p5199_p2 = pneg %p5198_p0 }
 0x14a   : > { %p5206_p10 = pnand %p5205_p9, %p5199_p2 }
 0x14c   : > { %5209 = shalt.err (!%p5206_p10)
}
 0x14d   : > { %4697 = dma.hbm_to_vmem [thread:$0]  (!%p5747_p6), %s5611_s24, 16, %s847_s10, [#allocation15]  }
 0x14e   : > { %s5527_s3 = smov [#allocation19]   ;;  %s5528_s5 = smov [#allocation22]  }
 0x14f   : > { %s871_s30 = sshll.u32 %s5527_s3, 4  ;;  %s896_s22 = sshll.u32 %s5528_s5, 4  ;;  %s872_s30 = int_to_ptr.vmem [resolvable:$true] %s871_s30  ;;  %s897_s22 = int_to_ptr.vmem [resolvable:$true] %s896_s22 }
 0x150   : > { %s5210_s2 = scalar_lea.hbm %s6465_s12, 16 }
 0x151   : > { %p5211_p11 = scmp.ne.s32.totalorder %s6465_s12, %s5210_s2  ;;  %p5217_p1 = scmp.lt.u32.totalorder %s5210_s2, %s6465_s12 }
 0x153   : > { %p5213_p12 = pnand %p5211_p11, %p5759_p8 }
 0x155   : > { %p5214_p13 = pneg %p5213_p12 }
 0x157   : > { %p5219_p4 = pnand %p5217_p1, %p5214_p13 }
 0x159   : > { %5222 = shalt.err (!%p5219_p4)
}
 0x15a   : > { %s5223_s7 = scalar_lea.vmem %s872_s30, 16  ;;  %s5230_s10 = scalar_lea.vmem %s872_s30, 32 }
 0x15b   : > { %p5224_p3 = scmp.ne.s32.totalorder %s872_s30, %s5223_s7  ;;  %p5231_p5 = scmp.lt.s32.totalorder %s872_s30, %s872_s30 }
 0x15c   : > { %p5232_p7 = scmp.lt.s32.totalorder %s5230_s10, %s5223_s7 }
 0x15d   : > { %p5226_p0 = pnand %p5224_p3, %p5759_p8 }
 0x15e   : > { %p5233_p9 = por %p5232_p7, %p5231_p5 }
 0x15f   : > { %p5227_p2 = pneg %p5226_p0 }
 0x161   : > { %p5234_p10 = pnand %p5233_p9, %p5227_p2 }
 0x163   : > { %5237 = shalt.err (!%p5234_p10)
}
 0x164   : > { %4703 = dma.hbm_to_vmem [thread:$0]  (!%p5747_p6), %s6465_s12, 16, %s872_s30, [#allocation18]  }
 0x165   : > { %s5238_s23 = scalar_lea.hbm %s6468_s4, 16 }
 0x166   : > { %p5239_p11 = scmp.ne.s32.totalorder %s6468_s4, %s5238_s23  ;;  %p5245_p1 = scmp.lt.u32.totalorder %s5238_s23, %s6468_s4 }
 0x168   : > { %p5241_p12 = pnand %p5239_p11, %p5759_p8 }
 0x16a   : > { %p5242_p13 = pneg %p5241_p12 }
 0x16c   : > { %p5247_p4 = pnand %p5245_p1, %p5242_p13 }
 0x16e   : > { %5250 = shalt.err (!%p5247_p4)
}
 0x16f   : > { %s5251_s3 = scalar_lea.vmem %s897_s22, 16  ;;  %s5258_s5 = scalar_lea.vmem %s897_s22, 32 }
 0x170   : > { %p5252_p3 = scmp.ne.s32.totalorder %s897_s22, %s5251_s3  ;;  %p5259_p5 = scmp.lt.s32.totalorder %s897_s22, %s897_s22 }
 0x171   : > { %p5260_p7 = scmp.lt.s32.totalorder %s5258_s5, %s5251_s3 }
 0x172   : > { %p5254_p0 = pnand %p5252_p3, %p5759_p8 }
 0x173   : > { %p5261_p9 = por %p5260_p7, %p5259_p5 }
 0x174   : > { %p5255_p2 = pneg %p5254_p0 }
 0x176   : > { %p5262_p10 = pnand %p5261_p9, %p5255_p2 }
 0x178   : > { %5265 = shalt.err (!%p5262_p10)
}
 0x179   : > { %4709 = dma.hbm_to_vmem [thread:$0]  (!%p5747_p6), %s6468_s4, 16, %s897_s22, [#allocation21]  }
 0x17a   : > { %s5529_s30 = smov [#allocation25]   ;;  %s5530_s7 = smov [#allocation28]  }
 0x17b   : > { %s930_s2 = sshll.u32 %s5529_s30, 4  ;;  %s955_s10 = sshll.u32 %s5530_s7, 4  ;;  %s931_s2 = int_to_ptr.vmem [resolvable:$true] %s930_s2  ;;  %s956_s10 = int_to_ptr.vmem [resolvable:$true] %s955_s10 }
 0x17c   : > { %s5266_s23 = scalar_lea.hbm %s6461_s19, 16 }
 0x17d   : > { %p5267_p11 = scmp.ne.s32.totalorder %s6461_s19, %s5266_s23  ;;  %p5273_p1 = scmp.lt.u32.totalorder %s5266_s23, %s6461_s19 }
 0x17f   : > { %p5269_p12 = pnand %p5267_p11, %p5759_p8 }
 0x181   : > { %p5270_p13 = pneg %p5269_p12 }
 0x183   : > { %p5275_p4 = pnand %p5273_p1, %p5270_p13 }
 0x185   : > { %5278 = shalt.err (!%p5275_p4)
}
 0x186   : > { %s5279_s3 = scalar_lea.vmem %s931_s2, 16  ;;  %s5286_s22 = scalar_lea.vmem %s931_s2, 32 }
 0x187   : > { %p5280_p3 = scmp.ne.s32.totalorder %s931_s2, %s5279_s3  ;;  %p5287_p5 = scmp.lt.s32.totalorder %s931_s2, %s931_s2 }
 0x188   : > { %p5288_p7 = scmp.lt.s32.totalorder %s5286_s22, %s5279_s3 }
 0x189   : > { %p5282_p0 = pnand %p5280_p3, %p5759_p8 }
 0x18a   : > { %p5289_p9 = por %p5288_p7, %p5287_p5 }
 0x18b   : > { %p5283_p2 = pneg %p5282_p0 }
 0x18d   : > { %p5290_p10 = pnand %p5289_p9, %p5283_p2 }
 0x18f   : > { %5293 = shalt.err (!%p5290_p10)
}
 0x190   : > { %s6473_s5 = sld [smem:[#allocation64_spill]] }
 0x191   : > { %4715 = dma.hbm_to_vmem [thread:$0]  (!%p5747_p6), %s6461_s19, 16, %s931_s2, [#allocation24]  }
 0x196   : > { %s5294_s30 = scalar_lea.hbm %s6473_s5, 16 }
 0x197   : > { %p5295_p11 = scmp.ne.s32.totalorder %s6473_s5, %s5294_s30  ;;  %p5301_p1 = scmp.lt.u32.totalorder %s5294_s30, %s6473_s5 }
 0x199   : > { %p5297_p12 = pnand %p5295_p11, %p5759_p8 }
 0x19b   : > { %p5298_p13 = pneg %p5297_p12 }
 0x19d   : > { %p5303_p4 = pnand %p5301_p1, %p5298_p13 }
 0x19f   : > { %5306 = shalt.err (!%p5303_p4)
}
 0x1a0   : > { %s5307_s7 = scalar_lea.vmem %s956_s10, 16  ;;  %s5314_s23 = scalar_lea.vmem %s956_s10, 32 }
 0x1a1   : > { %p5308_p3 = scmp.ne.s32.totalorder %s956_s10, %s5307_s7  ;;  %p5315_p5 = scmp.lt.s32.totalorder %s956_s10, %s956_s10 }
 0x1a2   : > { %p5316_p7 = scmp.lt.s32.totalorder %s5314_s23, %s5307_s7 }
 0x1a3   : > { %p5310_p0 = pnand %p5308_p3, %p5759_p8 }
 0x1a4   : > { %p5317_p9 = por %p5316_p7, %p5315_p5 }
 0x1a5   : > { %p5311_p2 = pneg %p5310_p0 }
 0x1a7   : > { %p5318_p10 = pnand %p5317_p9, %p5311_p2 }
 0x1a9   : > { %5321 = shalt.err (!%p5318_p10)
}
 0x1aa   : > { %4721 = dma.hbm_to_vmem [thread:$0]  (!%p5747_p6), %s6473_s5, 16, %s956_s10, [#allocation27]  }
 0x1ab   : > { %s4153_s1 = sadd.s32 4294967294, %s5484_s0   ;;  %s5932_s2 = sadd.s32 1, %s5484_s0  }
 0x1ac   : > { %s94_s11 = sadd.s32 1, %s5480_s18  ;;  %s91_s3 = ssub.s32 %s5484_s0, %s5932_s2 }
 0x1ad   : > { %s6474_s22 = sld [smem:[#allocation41_spill]]  ;;  %p101_p8 = scmp.ne.s32.totalorder %s5480_s18, %s5476_s16 }
 0x1ae   : > { %p92_p11 = scmp.eq.s32.totalorder %s91_s3, 0  ;;  %p102_p12 = scmp.eq.s32.totalorder %s5484_s0, 0 }
 0x1af   : > { %p107_p13 = scmp.ne.s32.totalorder %s5476_s16, %s5472_s15  ;;  %p745_p1 = scmp.eq.s32.totalorder %s5729_s26, 1 }
 0x1b0   : > { %s5944_s30 = scalar_select %p92_p11, %s5480_s18, %s94_s11  }
 0x1b1   : > { %p103_p4 = por %p102_p12, %p101_p8  ;;  %p6475_p3 = scmp.eq.s32.totalorder %s5729_s26, 0 }
 0x1b2   : > { %p5952_p0 = por %p745_p1, %p101_p8  ;;  %p751_p2 = scmp.eq.s32.totalorder %s4153_s1, 1 }
 0x1b3   : > { %p5948_p6 = por %p6475_p3, %p107_p13  ;;  %p4748_p5 = scmp.lt.s32.totalorder %s5484_s0, 2 }
 0x1b4   : > { %s6477_s7 = scalar_select %p5952_p0, 1, 0 }
 0x1b5   : > { %s6476_s10 = scalar_select %p5948_p6, 1, 0 }
 0x1b6   : > { %s5958_s23 = sand.u32 1, %s5480_s18   ;;  %p5960_p7 = por %p751_p2, %p107_p13 }
 0x1b7   : > { %s4171_s3 = sshll.u32 %s5958_s23, 3  ;;  %s4172_s4 = sshll.u32 %s5484_s0, 7 }
 0x1b8   : > { %s6478_s11 = scalar_select %p5960_p7, 1, 0 }
 0x1b9   : > { %s5967_s5 = scalar_lea.hbm %s6474_s22, %s4172_s4  ;;  %s979_s1 = scalar_lea.vmem [#allocation2], %s4171_s3 }
 0x1ba   : > { %s986_s6 = sshll.u32 %s979_s1, 4  ;;  %p5969_p9 = pnand %p4748_p5, %p103_p4  ;;  %s5973_s6 = int_to_ptr.vmem [resolvable:$true] %s986_s6 }
 0x1bb   : > { %s976_s13 = scalar_lea.sflag [#allocation3], %s5958_s23  ;;  %s5322_s14 = scalar_lea.hbm %s5967_s5, 128 }
 0x1bc   : > { %p5323_p10 = scmp.ne.s32.totalorder %s5967_s5, %s5322_s14  ;;  %p5324_p8 = pneg %p5969_p9 }
 0x1bd   : > { %s5327_s4 = scalar_lea.hbm %s6474_s22, 256  ;;  %p5328_p13 = scmp.lt.u32.totalorder %s5967_s5, %s6474_s22 }
 0x1be   : > { %p5325_p11 = pnand %p5324_p8, %p5323_p10  ;;  %p5329_p1 = scmp.lt.u32.totalorder %s5327_s4, %s5322_s14 }
 0x1bf   : > { %p5331_p3 = scmp.lt.u32.totalorder %s5322_s14, %s5967_s5 }
 0x1c0   : > { %p5326_p12 = pneg %p5325_p11  ;;  %p5330_p4 = por %p5329_p1, %p5328_p13 }
 0x1c2   : > { %p5332_p2 = por %p5331_p3, %p5330_p4 }
 0x1c4   : > { %p5333_p5 = pnand %p5332_p2, %p5326_p12 }
 0x1c6   : > { %5336 = shalt.err (!%p5333_p5)
}
 0x1c7   : > { %s5337_s3 = scalar_lea.vmem %s5973_s6, 128  ;;  %s5531_s1 = smov [#allocation2]  }
 0x1c8   : > { %p5338_p7 = scmp.ne.s32.totalorder %s5973_s6, %s5337_s3  ;;  %s5342_s12 = sshll.u32 %s5531_s1, 4  ;;  %s5343_s12 = int_to_ptr.vmem [resolvable:$false] %s5342_s12 }
 0x1c9   : > { %s5344_s17 = scalar_lea.vmem %s5343_s12, 256  ;;  %p5345_p10 = scmp.lt.s32.totalorder %s5973_s6, %s5343_s12 }
 0x1ca   : > { %p5340_p0 = pnand %p5338_p7, %p5324_p8  ;;  %p5346_p11 = scmp.lt.s32.totalorder %s5344_s17, %s5337_s3 }
 0x1cc   : > { %p5341_p6 = pneg %p5340_p0  ;;  %p5347_p13 = por %p5346_p11, %p5345_p10 }
 0x1ce   : > { %p5348_p1 = pnand %p5347_p13, %p5341_p6 }
 0x1d0   : > { %5351 = shalt.err (!%p5348_p1)
}
 0x1d1   : > { %s6480_s14 = sld [smem:[#allocation42_spill]]  ;;  %s4173_s4 = sshll.u32 %s5484_s0, 4 }
 0x1d2   : > { %4725 = dma.hbm_to_vmem [thread:$0]  (!%p5969_p9), %s5967_s5, 128, %s5973_s6, %s976_s13  }
 0x1d3   : > { %s996_s17 = scalar_lea.vmem [#allocation5], %s5958_s23  ;;  %s6481_s3 = sand.u32 1, %s5484_s0  }
 0x1d4   : > { %s1003_s12 = sshll.u32 %s996_s17, 4  ;;  %s994_s19 = scalar_lea.sflag [#allocation6], %s6481_s3  ;;  %s1004_s12 = int_to_ptr.vmem [resolvable:$true] %s1003_s12 }
 0x1d7   : > { %s6000_s1 = scalar_lea.hbm %s6480_s14, %s4173_s4  ;;  %s5357_s21 = scalar_lea.hbm %s6480_s14, 32 }
 0x1d8   : > { %s5352_s20 = scalar_lea.hbm %s6000_s1, 16  ;;  %p5358_p12 = scmp.lt.u32.totalorder %s6000_s1, %s6480_s14 }
 0x1d9   : > { %p5353_p6 = scmp.ne.s32.totalorder %s6000_s1, %s5352_s20  ;;  %p5359_p4 = scmp.lt.u32.totalorder %s5357_s21, %s5352_s20 }
 0x1da   : > { %p5361_p2 = scmp.lt.u32.totalorder %s5352_s20, %s6000_s1 }
 0x1db   : > { %p5355_p0 = pnand %p5353_p6, %p5324_p8  ;;  %p5360_p3 = por %p5359_p4, %p5358_p12 }
 0x1dd   : > { %p5356_p7 = pneg %p5355_p0  ;;  %p5362_p5 = por %p5361_p2, %p5360_p3 }
 0x1df   : > { %p5363_p10 = pnand %p5362_p5, %p5356_p7 }
 0x1e1   : > { %5366 = shalt.err (!%p5363_p10)
}
 0x1e2   : > { %s5367_s13 = scalar_lea.vmem %s1004_s12, 16  ;;  %s5532_s6 = smov [#allocation5]  }
 0x1e3   : > { %p5368_p11 = scmp.ne.s32.totalorder %s1004_s12, %s5367_s13  ;;  %s5372_s5 = sshll.u32 %s5532_s6, 4  ;;  %s5373_s5 = int_to_ptr.vmem [resolvable:$false] %s5372_s5 }
 0x1e4   : > { %s5374_s23 = scalar_lea.vmem %s5373_s5, 32  ;;  %p5375_p6 = scmp.lt.s32.totalorder %s1004_s12, %s5373_s5 }
 0x1e5   : > { %p5370_p13 = pnand %p5368_p11, %p5324_p8  ;;  %p5376_p0 = scmp.lt.s32.totalorder %s5374_s23, %s5367_s13 }
 0x1e7   : > { %p5371_p1 = pneg %p5370_p13  ;;  %p5377_p4 = por %p5376_p0, %p5375_p6 }
 0x1e9   : > { %p5378_p12 = pnand %p5377_p4, %p5371_p1 }
 0x1eb   : > { %5381 = shalt.err (!%p5378_p12)
}
 0x1ec   : > { %4728 = dma.hbm_to_vmem [thread:$0]  (!%p5969_p9), %s6000_s1, 16, %s1004_s12, %s994_s19  }
 0x1ed   : > { %p6482_p7 = scmp.ne.s32.totalorder %s6470_s28, 0 }
 0x1ee   : > { %s6023_s21 = sand.u32 (!%p6482_p7), 1, %s5476_s16   ;;  %p6483_p8 = scmp.ne.s32.totalorder (!%p6482_p7), %s6476_s10, 0 }
 0x1ef   : > { %1012 = sbr.rel (%p6482_p7) target bundleno = 8392 (0x20c8), region = 140  ;;  %s4175_s20 = sshll.u32 (!%p6482_p7), %s6023_s21, 3 }
 0x1f0   : > { %s1015_s4 = scalar_lea.sflag (!%p6482_p7), [#allocation3], %s6023_s21  ;;  %s1018_s17 = scalar_lea.vmem (!%p6482_p7), [#allocation2], %s4175_s20 }
 0x1f6   : > { %5427 = dma.done.wait (%p6483_p8), %s1015_s4, 128  }
 0x1f7   : > { %5429 = vsyncadd (%p6483_p8), %s1015_s4, 4294967168  ;;  %s1023_s8 = sand.u32 1, %s5729_s26   ;;  %s1026_s28 = scalar_lea.vmem [#allocation5], %s6023_s21 }
 0x1f8   : > { %s1024_s19 = scalar_lea.sflag [#allocation6], %s1023_s8 }
 0x1f9   : > { %5431 = dma.done.wait (%p6483_p8), %s1024_s19, 16  }
 0x1fa   : > { %5433 = vsyncadd (%p6483_p8), %s1024_s19, 4294967280  ;;  %p6484_p9 = scmp.eq.s32.totalorder %s5729_s26, 0 }
 0x1fc   : > { %5435 = dma.done.wait (%p6484_p9), [#allocation6], 16   ;;  %p6485_p3 = pmov %p6484_p9 }
 0x1fe   : > { %5437 = vsyncadd (%p6485_p3), [#allocation6], 4294967280  ;;  %p6486_p2 = pmov %p6485_p3 }
 0x200   : > { %5439 = dma.done.wait (%p6486_p2), [#allocation9], 32   ;;  %p6487_p5 = pmov %p6486_p2 }
 0x201   : > { %p6488_p10 = pmov %p6486_p2 }
 0x202   : > { %5441 = vsyncadd (%p6487_p5), [#allocation9], 4294967264 }
 0x203   : > { %5443 = dma.done.wait (%p6488_p10), [#allocation12], 32   ;;  %p6489_p11 = pmov %p6486_p2 }
 0x204   : > { %p6490_p13 = pmov %p6486_p2 }
 0x205   : > { %5445 = vsyncadd (%p6489_p11), [#allocation12], 4294967264 }
 0x206   : > { %5447 = dma.done.wait (%p6490_p13), [#allocation15], 32   ;;  %p6491_p1 = pmov %p6486_p2 }
 0x208   : > { %5449 = vsyncadd (%p6491_p1), [#allocation15], 4294967264  ;;  %p6492_p6 = pmov %p6491_p1 }
 0x209   : > { %p6493_p0 = pmov %p6491_p1 }
 0x20a   : > { %5451 = dma.done.wait (%p6492_p6), [#allocation18], 32  }
 0x20b   : > { %5453 = vsyncadd (%p6493_p0), [#allocation18], 4294967264  ;;  %p6494_p4 = pmov %p6493_p0 }
 0x20c   : > { %p6495_p12 = pmov %p6493_p0 }
 0x20d   : > { %5455 = dma.done.wait (%p6494_p4), [#allocation21], 32  }
 0x20e   : > { %5457 = vsyncadd (%p6495_p12), [#allocation21], 4294967264  ;;  %p6496_p7 = pmov %p6493_p0 }
 0x20f   : > { %p6497_p8 = pmov %p6493_p0 }
 0x210   : > { %5459 = dma.done.wait (%p6496_p7), [#allocation24], 32  }
 0x211   : > { %5461 = vsyncadd (%p6497_p8), [#allocation24], 4294967264  ;;  %p6498_p9 = pmov %p6493_p0 }
 0x212   : > { %p6499_p3 = pmov %p6493_p0 }
 0x213   : > { %5463 = dma.done.wait (%p6498_p9), [#allocation27], 32  }
 0x214   : > { %5465 = vsyncadd (%p6499_p3), [#allocation27], 4294967264  ;;  %s6500_s10 = sld [smem:[#allocation45_spill]]  ;;  %vm1168_vm0 = vcmask 261120   ;;  %v1166_v0 = vld [vmem:[%s1018_s17] sm:$0xff]  ;;  %v5533_v10 = vmov 0.0|0.0  }
 0x215   : > { %v1169_v1 = vsel %vm1168_vm0, %v1166_v0, 0.0  ;;  %4556 = vmatprep.subr.bf16.mxu0 %v5533_v10  ;;  %vm5534_vm1 = vmmov 0   ;;  %v5535_v13 = vmov 0.0   ;;  %v4191_v19 = vld [vmem:[#allocation7] ss:$0 sm:$0xff]  ;;  %s5536_s1 = smov 120  }
 0x216   : > { %1170 = vadd.xlane.f32.xlu0 %v1169_v1  ;;  %4351 = vmatprep.mubr.msk.f32.mxu0 %vm5534_vm1, %v5535_v13  ;;  %v4192_v21 = vld [vmem:[#allocation8] ss:$0 sm:$0xff]  ;;  %v4193_v24 = vld [vmem:[#allocation10] ss:$0 sm:$0xff]  ;;  %s5537_s12 = smov 96   ;;  %s5538_s3 = smov 88  }
 0x217   : > { %4354 = vmatprep.subr.mxu1 %v5535_v13  ;;  %4356 = vmatprep.mubr.msk.f32.mxu1 %vm5534_vm1, %v5535_v13  ;;  %vm1286_vm2 = vcmask 64512   ;;  %v6110_v32 = vld [vmem:[%s1026_s28] ss:$0 sm:$0xff]  ;;  %s5539_s13 = smov 56   ;;  %s6501_s6 = sld [smem:[#allocation46_spill]]  ;;  %vm2401_vm3 = vcmask 523264  }
 0x218   : > { %s5540_s5 = smov 64   ;;  %s5541_s23 = smov 80  }
 0x219   : > { %s5542_s20 = smov 112   ;;  %s6429_s4 = smov 48  }
 0x21a   : > { %v1199_v7 = vld [vmem:[%s6500_s10] sm:$0xff]  ;;  %v1200_v8 = vld [vmem:[%s6500_s10 + $0x8] sm:$0xff]  ;;  %v1201_v9 = vld [vmem:[%s6500_s10 + $0x10] sm:$0xff]  ;;  %s5544_s17 = smov 104   ;;  %s5545_s8 = smov 72  }
 0x21b   : > { %v4557_v11 = vpack.c.bf16 %v1200_v8, %v1199_v7  ;;  %v1202_v12 = vld [vmem:[%s6500_s10 + $0x18] sm:$0xff]  ;;  %s6428_s19 = smov 40   ;;  %s6502_s28 = sld [smem:[#allocation50_spill]] }
 0x21c   : > { %v4560_v14 = vpack.c.bf16 %v1202_v12, %v1201_v9  ;;  %p6514_p5 = scmp.ne.s32.totalorder %s6477_s7, 0 }
 0x21d   : > { %4558 = vmatpush3.bf16.msra.mxu0 %v4557_v11  ;;  %v1624_v52 = vld [vmem:[%s6501_s6 + $0x8] sm:$0xff]  ;;  %v1456_v61 = vld [vmem:[%s6501_s6] sm:$0xff] }
 0x21e   : > { %4559 = vmatprep.subr.bf16.mxu0 %v5533_v10 }
 0x221   : > { %4561 = vmatpush3.bf16.msra.mxu0 %v4560_v14 }
 0x222   : > { %4364 = vmatprep.subr.mxu0 %v5535_v13 }
 0x2a3   : > { %v1171_v2 = vpop.xlane.xlu0 %1170 }
 0x2a4   : > { %v1173_v3 = vmul.f32 0.03125, %v1171_v2 }
 0x2a6   : > { %v1174_v4 = vsub.f32 %v1166_v0, %v1173_v3 }
 0x2a8   : > { %v1175_v5 = vmul.f32 %v1174_v4, %v1174_v4 }
 0x2aa   : > { %v1176_v6 = vsel %vm1168_vm0, %v1175_v5, 0.0 }
 0x2ab   : > { %1177 = vadd.xlane.f32.xlu0 %v1176_v6 }
 0x338   : > { %v1178_v15 = vpop.xlane.xlu0 %1177 }
 0x339   : > { %v1179_v16 = vmul.f32 0.03125, %v1178_v15 }
 0x33b   : > { %v1180_v17 = vadd.f32 1e-05, %v1179_v16 }
 0x33d   : > { %4856 = vrsqrt.f32 %v1180_v17 }
 0x347   : > { %v4857_v18 = vpop.eup %4856 }
 0x348   : > { %v1182_v20 = vmul.f32 %v4857_v18, %v1174_v4 }
 0x34a   : > { %v1190_v22 = vmul.f32 %v4191_v19, %v1182_v20 }
 0x34c   : > { %v6083_v23 = vadd.f32 %v4192_v21, %v1190_v22 }
 0x34e   : > { %4352 = vmatmul.mubr.msk.f32.vlgmr.msra.gmra.mrb[0].mxu0 %vm1168_vm0, %v6083_v23 }
 0x34f   : > { %4366 = vmatprep.mubr.msk.f32.mxu0 %vm5534_vm1, %v5535_v13 }
 0x421   : > { %v1279_v25 = vpop.f32.mrb[0].mxu0 }
 0x422   : > { %v6089_v26 = vadd.f32 %v4193_v24, %v1279_v25  ;;  %v4353_v27 = vpop.f32.mrb[1].mxu0 }
 0x424   : > { %1457 = vrot.lane.b32.xlu0 %v6089_v26, %s5536_s1  ;;  %1284 = vrot.lane.b32.xlu1 %v6089_v26, %s5537_s12 }
 0x428   : > { %1459 = vrot.lane.b32.xlu1 %v6089_v26, %s5538_s3 }
 0x496   : > { %v1285_v28 = vpop.permute.xlu1 %1284  ;;  %v1458_v30 = vpop.permute.xlu0 %1457 }
 0x497   : > { %4355 = vmatpush3.xpose.msk.msra.mxu1 %vm1286_vm2, %v1285_v28 }
 0x498   : > { %4359 = vmatprep.subr.mxu1 %v5535_v13 }
 0x49a   : > { %4357 = vmatmul.mubr.msk.f32.vlgmr.msra.gmra.mrb[0].mxu1 %vm1286_vm2, %v6089_v26  ;;  %v1460_v29 = vpop.permute.xlu1 %1459 }
 0x49b   : > { %4365 = vmatpush3.xpose.msk.msra.mxu0 %vm1286_vm2, %v1460_v29  ;;  %4361 = vmatprep.mubr.msk.f32.mxu1 %vm5534_vm1, %v5535_v13  ;;  %v1938_v29 = vld [vmem:[%s6501_s6 + $0x10] sm:$0xff] }
 0x49c   : > { %4374 = vmatprep.subr.mxu0 %v5535_v13 }
 0x49e   : > { %4367 = vmatmul.mubr.msk.f32.vlgmr.msra.gmra.mrb[2].mxu0 %vm1286_vm2, %v1458_v30 }
 0x49f   : > { %4376 = vmatprep.mubr.msk.f32.mxu0 %vm5534_vm1, %v5535_v13  ;;  %4375 = vmatpush3.msra.mxu0 %v1624_v52 }
 0x4a0   : > { %4384 = vmatprep.subr.mxu0 %v5535_v13 }
 0x56d   : > { %v1357_v31 = vpop.f32.mrb[0].mxu1 }
 0x56e   : > { %v1361_v33 = vmul.f32 0.35355338, %v1357_v31  ;;  %v4358_v34 = vpop.f32.mrb[1].mxu1 }
 0x570   : > { %v1368_v35 = vadd.f32 %v6110_v32, %v1361_v33 }
 0x571   : > { %v1531_v36 = vpop.f32.mrb[2].mxu0 }
 0x572   : > { %v1535_v37 = vmul.f32 0.35355338, %v1531_v36  ;;  %v4368_v38 = vpop.f32.mrb[3].mxu0  ;;  %v1369_v39 = vsel %vm1286_vm2, %v1368_v35, -inf }
 0x573   : > { %1370 = vmax.xlane.f32.xlu1 %v1369_v39 }
 0x574   : > { %v1536_v40 = vadd.f32 %v6110_v32, %v1535_v37 }
 0x576   : > { %v1537_v41 = vsel %vm1286_vm2, %v1536_v40, -inf }
 0x577   : > { %1538 = vmax.xlane.f32.xlu0 %v1537_v41 }
 0x58d   : > { %1548 = vrot.lane.b32.xlu0 %v6089_v26, %s5539_s13 }
 0x600   : > { %v1371_v42 = vpop.xlane.xlu1 %1370 }
 0x601   : > { %v1372_v43 = vsub.f32 %v1368_v35, %v1371_v42 }
 0x603   : > { %v1373_v44 = vmul.f32 1.442695, %v1372_v43  ;;  %v2180_v43 = vld [vmem:[%s6501_s6 + $0x18] sm:$0xff] }
 0x604   : > { %v1539_v45 = vpop.xlane.xlu0 %1538 }
 0x605   : > { %4858 = vpow2.f32 %v1373_v44  ;;  %v1540_v46 = vsub.f32 %v1536_v40, %v1539_v45 }
 0x607   : > { %v1541_v47 = vmul.f32 1.442695, %v1540_v46 }
 0x608   : > { %v1549_v58 = vpop.permute.xlu0 %1548 }
 0x609   : > { %4860 = vpow2.f32 %v1541_v47 }
 0x60f   : > { %v4859_v48 = vpop.eup %4858 }
 0x610   : > { %v1375_v49 = vsel %vm1286_vm2, %v4859_v48, 0.0 }
 0x611   : > { %1376 = vadd.xlane.f32.xlu1 %v1375_v49 }
 0x613   : > { %v4861_v50 = vpop.eup %4860 }
 0x614   : > { %v1543_v51 = vsel %vm1286_vm2, %v4861_v50, 0.0 }
 0x615   : > { %1544 = vadd.xlane.f32.xlu1 %v1543_v51 }
 0x626   : > { %1380 = vrot.lane.b32.xlu1 %v6089_v26, %s5540_s5 }
 0x62a   : > { %1773 = vrot.lane.b32.xlu1 %v6089_v26, %s5541_s23 }
 0x62e   : > { %1771 = vrot.lane.b32.xlu1 %v6089_v26, %s5542_s20 }
 0x69e   : > { %v1377_v53 = vpop.xlane.xlu1 %1376 }
 0x69f   : > { %4862 = vrcp.f32 %v1377_v53  ;;  %v4212_v53 = vld [vmem:[#allocation11] ss:$0 sm:$0xff] }
 0x6a2   : > { %v1545_v54 = vpop.xlane.xlu1 %1544 }
 0x6a3   : > { %4864 = vrcp.f32 %v1545_v54 }
 0x6a6   : > { %v1381_v55 = vpop.permute.xlu1 %1380 }
 0x6a7   : > { %4360 = vmatpush3.msra.mxu1 %v1381_v55 }
 0x6a8   : > { %4369 = vmatprep.subr.mxu1 %v5535_v13 }
 0x6a9   : > { %v4863_v56 = vpop.eup %4862 }
 0x6aa   : > { %v1379_v57 = vmul.f32 %v4863_v56, %v4859_v48  ;;  %v1774_v0 = vpop.permute.xlu1 %1773 }
 0x6ac   : > { %4362 = vmatmul.mubr.msk.f32.vlgmr.msra.gmra.mrb[2].mxu1 %vm1286_vm2, %v1379_v57 }
 0x6ad   : > { %v4865_v59 = vpop.eup %4864  ;;  %4370 = vmatpush3.msra.mxu1 %v1549_v58  ;;  %4371 = vmatprep.mubr.msk.f32.mxu1 %vm5534_vm1, %v5535_v13 }
 0x6ae   : > { %v1547_v60 = vmul.f32 %v4865_v59, %v4861_v50  ;;  %4379 = vmatprep.subr.mxu1 %v5535_v13  ;;  %v1772_v3 = vpop.permute.xlu1 %1771 }
 0x6b0   : > { %4372 = vmatmul.mubr.msk.f32.vlgmr.msra.gmra.mrb[4].mxu1 %vm1286_vm2, %v1547_v60 }
 0x6b1   : > { %4381 = vmatprep.mubr.msk.f32.mxu1 %vm5534_vm1, %v5535_v13  ;;  %4380 = vmatpush3.msra.mxu1 %v1456_v61 }
 0x6b2   : > { %4389 = vmatprep.subr.mxu1 %v5535_v13 }
 0x77f   : > { %v1452_v62 = vpop.f32.mrb[2].mxu1 }
 0x780   : > { %v4363_v63 = vpop.f32.mrb[3].mxu1  ;;  %4382 = vmatmul.mubr.msk.f32.vlgmr.msra.gmra.mrb[6].mxu1 %vm1286_vm2, %v1452_v62 }
 0x781   : > { %4391 = vmatprep.mubr.msk.f32.mxu1 %vm5534_vm1, %v5535_v13 }
 0x783   : > { %v1620_v1 = vpop.f32.mrb[4].mxu1 }
 0x784   : > { %v4373_v2 = vpop.f32.mrb[5].mxu1  ;;  %4377 = vmatmul.mubr.msk.f32.vlgmr.msra.gmra.mrb[4].mxu0 %vm1286_vm2, %v1620_v1  ;;  %v2294_v1 = vld [vmem:[%s6502_s28 + $0x8] sm:$0xff] }
 0x785   : > { %4385 = vmatpush3.xpose.msk.msra.mxu0 %vm1286_vm2, %v1774_v0  ;;  %4386 = vmatprep.mubr.msk.f32.mxu0 %vm5534_vm1, %v5535_v13  ;;  %v2293_v0 = vld [vmem:[%s6502_s28] sm:$0xff] }
 0x786   : > { %4394 = vmatprep.subr.mxu0 %v5535_v13  ;;  %v4563_v2 = vpack.c.bf16 %v2294_v1, %v2293_v0  ;;  %v4219_v0 = vld [vmem:[#allocation19] ss:$0 sm:$0xff] }
 0x788   : > { %4387 = vmatmul.mubr.msk.f32.vlgmr.msra.gmra.mrb[6].mxu0 %vm1286_vm2, %v1772_v3  ;;  %v2295_v3 = vld [vmem:[%s6502_s28 + $0x10] sm:$0xff] }
 0x789   : > { %4396 = vmatprep.mubr.msk.f32.mxu0 %vm5534_vm1, %v5535_v13  ;;  %4395 = vmatpush3.msra.mxu0 %v1938_v29 }
 0x78a   : > { %4404 = vmatprep.subr.mxu0 %v5535_v13 }
 0x853   : > { %v1767_v4 = vpop.f32.mrb[6].mxu1 }
 0x854   : > { %v4383_v5 = vpop.f32.mrb[7].mxu1 }
 0x857   : > { %v1694_v6 = vpop.f32.mrb[4].mxu0 }
 0x858   : > { %v1768_v7 = vadd.f32 %v1767_v4, %v1694_v6  ;;  %v4378_v8 = vpop.f32.mrb[5].mxu0  ;;  %v2296_v4 = vld [vmem:[%s6502_s28 + $0x18] sm:$0xff] }
 0x85b   : > { %v1845_v9 = vpop.f32.mrb[6].mxu0 }
 0x85c   : > { %v1849_v11 = vmul.f32 0.35355338, %v1845_v9  ;;  %v4388_v12 = vpop.f32.mrb[7].mxu0  ;;  %v4213_v9 = vld [vmem:[#allocation13] ss:$0 sm:$0xff] }
 0x85d   : > { %v4214_v12 = vld [vmem:[#allocation14] ss:$0 sm:$0xff] }
 0x85e   : > { %v1850_v14 = vadd.f32 %v6110_v32, %v1849_v11 }
 0x860   : > { %v1851_v15 = vsel %vm1286_vm2, %v1850_v14, -inf }
 0x861   : > { %1852 = vmax.xlane.f32.xlu1 %v1851_v15 }
 0x872   : > { %1862 = vrot.lane.b32.xlu1 %v6089_v26, %s6429_s4  ;;  %s6504_s4 = sld [smem:[#allocation55_spill]] }
 0x876   : > { %2013 = vrot.lane.b32.xlu1 %v6089_v26, %s5544_s17 }
 0x8ee   : > { %v1853_v16 = vpop.xlane.xlu1 %1852 }
 0x8ef   : > { %v1854_v17 = vsub.f32 %v1850_v14, %v1853_v16 }
 0x8f1   : > { %v1855_v18 = vmul.f32 1.442695, %v1854_v17 }
 0x8f2   : > { %v1863_v19 = vpop.permute.xlu1 %1862 }
 0x8f3   : > { %4866 = vpow2.f32 %v1855_v18  ;;  %4390 = vmatpush3.msra.mxu1 %v1863_v19 }
 0x8f4   : > { %4399 = vmatprep.subr.mxu1 %v5535_v13 }
 0x8f6   : > { %v2014_v28 = vpop.permute.xlu1 %2013 }
 0x8fd   : > { %v4867_v20 = vpop.eup %4866 }
 0x8fe   : > { %v1857_v21 = vsel %vm1286_vm2, %v4867_v20, 0.0 }
 0x8ff   : > { %1858 = vadd.xlane.f32.xlu0 %v1857_v21 }
 0x915   : > { %2015 = vrot.lane.b32.xlu0 %v6089_v26, %s5545_s8 }
 0x98c   : > { %v1859_v22 = vpop.xlane.xlu0 %1858 }
 0x98d   : > { %4868 = vrcp.f32 %v1859_v22 }
 0x990   : > { %v2016_v27 = vpop.permute.xlu0 %2015 }
 0x997   : > { %v4869_v24 = vpop.eup %4868 }
 0x998   : > { %v1861_v25 = vmul.f32 %v4869_v24, %v4867_v20 }
 0x99a   : > { %4392 = vmatmul.mubr.msk.f32.vlgmr.msra.gmra.mrb[8].mxu1 %vm1286_vm2, %v1861_v25 }
 0x99b   : > { %4400 = vmatpush3.xpose.msk.msra.mxu1 %vm1286_vm2, %v2016_v27  ;;  %4401 = vmatprep.mubr.msk.f32.mxu1 %vm5534_vm1, %v5535_v13 }
 0x99c   : > { %4409 = vmatprep.subr.mxu1 %v5535_v13 }
 0x99e   : > { %4402 = vmatmul.mubr.msk.f32.vlgmr.msra.gmra.mrb[10].mxu1 %vm1286_vm2, %v2014_v28 }
 0x99f   : > { %4411 = vmatprep.mubr.msk.f32.mxu1 %vm5534_vm1, %v5535_v13  ;;  %4410 = vmatpush3.msra.mxu1 %v2180_v43 }
 0x9a0   : > { %4568 = vmatprep.subr.bf16.mxu1 %v5533_v10 }
 0xa6d   : > { %v1934_v30 = vpop.f32.mrb[8].mxu1 }
 0xa6e   : > { %v4393_v31 = vpop.f32.mrb[9].mxu1  ;;  %4397 = vmatmul.mubr.msk.f32.vlgmr.msra.gmra.mrb[8].mxu0 %vm1286_vm2, %v1934_v30  ;;  %v4215_v30 = vld [vmem:[#allocation16] ss:$0 sm:$0xff] }
 0xa6f   : > { %4406 = vmatprep.mubr.msk.f32.mxu0 %vm5534_vm1, %v5535_v13 }
 0xa71   : > { %v2087_v33 = vpop.f32.mrb[10].mxu1 }
 0xa72   : > { %v2091_v34 = vmul.f32 0.35355338, %v2087_v33  ;;  %v4403_v35 = vpop.f32.mrb[11].mxu1 }
 0xa74   : > { %v2092_v36 = vadd.f32 %v6110_v32, %v2091_v34 }
 0xa76   : > { %v2093_v37 = vsel %vm1286_vm2, %v2092_v36, -inf }
 0xa77   : > { %2094 = vmax.xlane.f32.xlu1 %v2093_v37 }
 0xb04   : > { %v2095_v38 = vpop.xlane.xlu1 %2094 }
 0xb05   : > { %v2096_v39 = vsub.f32 %v2092_v36, %v2095_v38 }
 0xb07   : > { %v2097_v40 = vmul.f32 1.442695, %v2096_v39 }
 0xb09   : > { %4870 = vpow2.f32 %v2097_v40 }
 0xb13   : > { %v4871_v41 = vpop.eup %4870 }
 0xb14   : > { %v2099_v42 = vsel %vm1286_vm2, %v4871_v41, 0.0 }
 0xb15   : > { %2100 = vadd.xlane.f32.xlu0 %v2099_v42 }
 0xb2b   : > { %2104 = vrot.lane.b32.xlu0 %v6089_v26, %s6428_s19  ;;  %s6503_s19 = sld [smem:[#allocation51_spill]] }
 0xb31   : > { %v2386_v16 = vld [vmem:[%s6503_s19] sm:$0xff]  ;;  %v2387_v17 = vld [vmem:[%s6503_s19 + $0x8] sm:$0xff]  ;;  %v2388_v19 = vld [vmem:[%s6503_s19 + $0x10] sm:$0xff] }
 0xb32   : > { %v4569_v18 = vpack.c.bf16 %v2387_v17, %v2386_v16  ;;  %v2389_v20 = vld [vmem:[%s6503_s19 + $0x18] sm:$0xff]  ;;  %v2390_v22 = vld [vmem:[%s6503_s19 + $0x20] sm:$0xff]  ;;  %v2391_v24 = vld [vmem:[%s6503_s19 + $0x28] sm:$0xff] }
 0xb33   : > { %v4572_v21 = vpack.c.bf16 %v2389_v20, %v2388_v19  ;;  %v4575_v25 = vpack.c.bf16 %v2391_v24, %v2390_v22  ;;  %v2392_v27 = vld [vmem:[%s6503_s19 + $0x30] sm:$0xff]  ;;  %v2393_v28 = vld [vmem:[%s6503_s19 + $0x38] sm:$0xff] }
 0xb34   : > { %v4578_v29 = vpack.c.bf16 %v2393_v28, %v2392_v27 }
 0xb41   : > { %v2008_v44 = vpop.f32.mrb[8].mxu0 }
 0xb42   : > { %v2012_v45 = vadd.f32 %v2008_v44, %v1768_v7  ;;  %v4398_v46 = vpop.f32.mrb[9].mxu0  ;;  %v4217_v44 = vld [vmem:[#allocation17] ss:$0 sm:$0xff] }
 0xba2   : > { %v2101_v47 = vpop.xlane.xlu0 %2100 }
 0xba3   : > { %4872 = vrcp.f32 %v2101_v47 }
 0xba6   : > { %v2105_v48 = vpop.permute.xlu0 %2104 }
 0xba7   : > { %4405 = vmatpush3.msra.mxu0 %v2105_v48 }
 0xba8   : > { %4562 = vmatprep.subr.bf16.mxu0 %v5533_v10 }
 0xbad   : > { %v4873_v49 = vpop.eup %4872 }
 0xbae   : > { %v2103_v50 = vmul.f32 %v4873_v49, %v4871_v41 }
 0xbb0   : > { %4407 = vmatmul.mubr.msk.f32.vlgmr.msra.gmra.mrb[10].mxu0 %vm1286_vm2, %v2103_v50 }
 0xbb1   : > { %4422 = vmatprep.mubr.msk.f32.mxu0 %vm5534_vm1, %v5535_v13  ;;  %4564 = vmatpush3.bf16.msra.mxu0 %v4563_v2  ;;  %v4220_v2 = vld [vmem:[#allocation20] ss:$0 sm:$0xff] }
 0xbb2   : > { %4565 = vmatprep.subr.bf16.mxu0 %v5533_v10 }
 0xc83   : > { %v2176_v26 = vpop.f32.mrb[10].mxu0 }
 0xc84   : > { %v4408_v51 = vpop.f32.mrb[11].mxu0  ;;  %4412 = vmatmul.mubr.msk.f32.vlgmr.msra.gmra.mrb[12].mxu1 %vm1286_vm2, %v2176_v26 }
 0xc85   : > { %4441 = vmatprep.mubr.msk.f32.mxu1 %vm5534_vm1, %v5535_v13  ;;  %4570 = vmatpush3.bf16.msra.mxu1 %v4569_v18 }
 0xc86   : > { %4571 = vmatprep.subr.bf16.mxu1 %v5533_v10 }
 0xc89   : > { %4573 = vmatpush3.bf16.msra.mxu1 %v4572_v21 }
 0xc8a   : > { %4574 = vmatprep.subr.bf16.mxu1 %v5533_v10 }
 0xc8d   : > { %4576 = vmatpush3.bf16.msra.mxu1 %v4575_v25 }
 0xc8e   : > { %4577 = vmatprep.subr.bf16.mxu1 %v5533_v10 }
 0xc91   : > { %4579 = vmatpush3.bf16.msra.mxu1 %v4578_v29 }
 0xc92   : > { %4460 = vmatprep.subr.mxu1 %v5535_v13 }
 0xd57   : > { %v2250_v52 = vpop.f32.mrb[12].mxu1 }
 0xd58   : > { %v2254_v54 = vadd.f32 %v2250_v52, %v2012_v45  ;;  %v4413_v55 = vpop.f32.mrb[13].mxu1 }
 0xd59   : > { %v2506_v55 = vld [vmem:[%s6504_s4 + $0x8] sm:$0xff] }
 0xd5a   : > { %v2262_v56 = vadd.f32 %v4212_v53, %v2254_v54  ;;  %v2505_v54 = vld [vmem:[%s6504_s4] sm:$0xff] }
 0xd5c   : > { %v2263_v57 = vadd.f32 %v2262_v56, %v6083_v23  ;;  %v4566_v23 = vpack.c.bf16 %v2296_v4, %v2295_v3  ;;  %v4581_v56 = vpack.c.bf16 %v2506_v55, %v2505_v54 }
 0xd5e   : > { %v2264_v58 = vsel %vm1168_vm0, %v2263_v57, 0.0  ;;  %4567 = vmatpush3.bf16.msra.mxu0 %v4566_v23  ;;  %v4221_v23 = vld [vmem:[#allocation22] ss:$0 sm:$0xff] }
 0xd5f   : > { %2265 = vadd.xlane.f32.xlu1 %v2264_v58  ;;  %4580 = vmatprep.subr.bf16.mxu0 %v5533_v10  ;;  %v2508_v58 = vld [vmem:[%s6504_s4 + $0x18] sm:$0xff] }
 0xdec   : > { %v2266_v59 = vpop.xlane.xlu1 %2265 }
 0xded   : > { %v2267_v60 = vmul.f32 0.03125, %v2266_v59 }
 0xdef   : > { %v2268_v61 = vsub.f32 %v2263_v57, %v2267_v60  ;;  %v2507_v57 = vld [vmem:[%s6504_s4 + $0x10] sm:$0xff] }
 0xdf0   : > { %v4584_v59 = vpack.c.bf16 %v2508_v58, %v2507_v57 }
 0xdf1   : > { %v2269_v62 = vmul.f32 %v2268_v61, %v2268_v61 }
 0xdf3   : > { %v2270_v63 = vsel %vm1168_vm0, %v2269_v62, 0.0 }
 0xdf4   : > { %2271 = vadd.xlane.f32.xlu1 %v2270_v63 }
 0xe81   : > { %v2272_v5 = vpop.xlane.xlu1 %2271 }
 0xe82   : > { %v2273_v6 = vmul.f32 0.03125, %v2272_v5 }
 0xe84   : > { %v2274_v7 = vadd.f32 1e-05, %v2273_v6 }
 0xe86   : > { %4874 = vrsqrt.f32 %v2274_v7 }
 0xe90   : > { %v4875_v8 = vpop.eup %4874 }
 0xe91   : > { %v2276_v11 = vmul.f32 %v4875_v8, %v2268_v61 }
 0xe93   : > { %v2284_v14 = vmul.f32 %v4213_v9, %v2276_v11 }
 0xe95   : > { %v2292_v15 = vadd.f32 %v4214_v12, %v2284_v14 }
 0xe97   : > { %4423 = vmatmul.mubr.msk.f32.vlgmr.msra.gmra.mrb[12].mxu0 %vm1168_vm0, %v2292_v15 }
 0xe98   : > { %4452 = vmatprep.mubr.msk.f32.mxu0 %vm5534_vm1, %v5535_v13  ;;  %4582 = vmatpush3.bf16.msra.mxu0 %v4581_v56 }
 0xe99   : > { %4583 = vmatprep.subr.bf16.mxu0 %v5533_v10 }
 0xe9c   : > { %4585 = vmatpush3.bf16.msra.mxu0 %v4584_v59 }
 0xe9d   : > { %4455 = vmatprep.subr.mxu0 %v5535_v13 }
 0xf6a   : > { %v2373_v31 = vpop.f32.mrb[12].mxu0 }
 0xf6b   : > { %v2374_v33 = vadd.f32 %v4215_v30, %v2373_v31  ;;  %v4424_v34 = vpop.f32.mrb[13].mxu0 }
 0xf6d   : > { %v2377_v35 = vmul.f32 %v2374_v33, %v2374_v33 }
 0xf6f   : > { %v2378_v36 = vmul.f32 %v2377_v35, %v2374_v33 }
 0xf71   : > { %v2379_v37 = vmul.f32 0.044715, %v2378_v36 }
 0xf73   : > { %v2380_v38 = vadd.f32 %v2379_v37, %v2374_v33 }
 0xf75   : > { %v2381_v39 = vmul.f32 0.7978846, %v2380_v38 }
 0xf77   : > { %4876 = vtanh.f32 %v2381_v39 }
 0xf81   : > { %v4877_v40 = vpop.eup %4876 }
 0xf82   : > { %v2383_v41 = vadd.f32 1.0, %v4877_v40 }
 0xf84   : > { %v2384_v42 = vmul.f32 0.5, %v2383_v41 }
 0xf86   : > { %v2385_v43 = vmul.f32 %v2384_v42, %v2374_v33 }
 0xf88   : > { %4442 = vmatmul.mubr.msk.f32.vlgmr.msra.gmra.mrb[14].mxu1 %vm2401_vm3, %v2385_v43 }
 0xf89   : > { %4462 = vmatprep.mubr.msk.f32.mxu1 %vm5534_vm1, %v5535_v13 }
0x105b   : > { %v2471_v45 = vpop.f32.mrb[14].mxu1 }
0x105c   : > { %v2472_v46 = vadd.f32 %v4217_v44, %v2471_v45  ;;  %v4443_v47 = vpop.f32.mrb[15].mxu1 }
0x105e   : > { %v2475_v48 = vadd.f32 %v2472_v46, %v2292_v15 }
0x1060   : > { %v2476_v49 = vsel %vm1168_vm0, %v2475_v48, 0.0 }
0x1061   : > { %2477 = vadd.xlane.f32.xlu1 %v2476_v49 }
0x10ee   : > { %v2478_v50 = vpop.xlane.xlu1 %2477 }
0x10ef   : > { %v2479_v26 = vmul.f32 0.03125, %v2478_v50 }
0x10f1   : > { %v2480_v51 = vsub.f32 %v2475_v48, %v2479_v26 }
0x10f3   : > { %v2481_v52 = vmul.f32 %v2480_v51, %v2480_v51 }
0x10f5   : > { %v2482_v53 = vsel %vm1168_vm0, %v2481_v52, 0.0 }
0x10f6   : > { %2483 = vadd.xlane.f32.xlu1 %v2482_v53 }
0x1183   : > { %v2484_v60 = vpop.xlane.xlu1 %2483 }
0x1184   : > { %v2485_v61 = vmul.f32 0.03125, %v2484_v60 }
0x1186   : > { %v2486_v62 = vadd.f32 1e-05, %v2485_v61 }
0x1188   : > { %4878 = vrsqrt.f32 %v2486_v62 }
0x1192   : > { %v4879_v63 = vpop.eup %4878 }
0x1193   : > { %v2488_v1 = vmul.f32 %v4879_v63, %v2480_v51 }
0x1195   : > { %v2496_v3 = vmul.f32 %v4219_v0, %v2488_v1 }
0x1197   : > { %v6221_v4 = vadd.f32 %v4220_v2, %v2496_v3 }
0x1199   : > { %4453 = vmatmul.mubr.msk.f32.vlgmr.msra.gmra.mrb[14].mxu0 %vm1168_vm0, %v6221_v4 }
0x119a   : > { %4457 = vmatprep.mubr.msk.f32.mxu0 %vm5534_vm1, %v5535_v13 }
0x126c   : > { %v2585_v5 = vpop.f32.mrb[14].mxu0 }
0x126d   : > { %v6227_v6 = vadd.f32 %v4221_v23, %v2585_v5  ;;  %v4454_v7 = vpop.f32.mrb[15].mxu0 }
0x126f   : > { %2758 = vrot.lane.b32.xlu0 %v6227_v6, %s5538_s3  ;;  %2590 = vrot.lane.b32.xlu1 %v6227_v6, %s5537_s12  ;;  %s6506_s12 = smov 48   ;;  %s6507_s3 = smov 40  }
0x1273   : > { %2756 = vrot.lane.b32.xlu0 %v6227_v6, %s5536_s1  ;;  %s6505_s1 = sld [smem:[#allocation57_spill]] }
0x1279   : > { %v2923_v36 = vld [vmem:[%s6505_s1 + $0x8] sm:$0xff]  ;;  %v2755_v45 = vld [vmem:[%s6505_s1] sm:$0xff] }
0x12e1   : > { %v2591_v8 = vpop.permute.xlu1 %2590  ;;  %v2759_v9 = vpop.permute.xlu0 %2758 }
0x12e2   : > { %4456 = vmatpush3.xpose.msk.msra.mxu0 %vm1286_vm2, %v2591_v8 }
0x12e3   : > { %4465 = vmatprep.subr.mxu0 %v5535_v13 }
0x12e5   : > { %4458 = vmatmul.mubr.msk.f32.vlgmr.msra.gmra.mrb[16].mxu0 %vm1286_vm2, %v6227_v6  ;;  %v2757_v11 = vpop.permute.xlu0 %2756 }
0x12e6   : > { %4466 = vmatpush3.xpose.msk.msra.mxu0 %vm1286_vm2, %v2759_v9  ;;  %4467 = vmatprep.mubr.msk.f32.mxu0 %vm5534_vm1, %v5535_v13  ;;  %v3237_v9 = vld [vmem:[%s6505_s1 + $0x10] sm:$0xff] }
0x12e7   : > { %4475 = vmatprep.subr.mxu0 %v5535_v13 }
0x12e9   : > { %4468 = vmatmul.mubr.msk.f32.vlgmr.msra.gmra.mrb[18].mxu0 %vm1286_vm2, %v2757_v11 }
0x12ea   : > { %4477 = vmatprep.mubr.msk.f32.mxu0 %vm5534_vm1, %v5535_v13  ;;  %4476 = vmatpush3.msra.mxu0 %v2923_v36 }
0x12eb   : > { %4485 = vmatprep.subr.mxu0 %v5535_v13 }
0x13b8   : > { %v2662_v12 = vpop.f32.mrb[16].mxu0 }
0x13b9   : > { %v2666_v14 = vmul.f32 0.35355338, %v2662_v12  ;;  %v4459_v15 = vpop.f32.mrb[17].mxu0 }
0x13bb   : > { %v2667_v16 = vadd.f32 %v6110_v32, %v2666_v14 }
0x13bc   : > { %v2830_v17 = vpop.f32.mrb[18].mxu0 }
0x13bd   : > { %v2834_v18 = vmul.f32 0.35355338, %v2830_v17  ;;  %v4469_v19 = vpop.f32.mrb[19].mxu0  ;;  %v2668_v20 = vsel %vm1286_vm2, %v2667_v16, -inf }
0x13be   : > { %2669 = vmax.xlane.f32.xlu0 %v2668_v20 }
0x13bf   : > { %v2835_v21 = vadd.f32 %v6110_v32, %v2834_v18 }
0x13c1   : > { %v2836_v22 = vsel %vm1286_vm2, %v2835_v21, -inf }
0x13c2   : > { %2837 = vmax.xlane.f32.xlu1 %v2836_v22 }
0x13d3   : > { %2847 = vrot.lane.b32.xlu1 %v6227_v6, %s5539_s13  ;;  %s6508_s13 = sld [smem:[#allocation58_spill]] }
0x13d7   : > { %3072 = vrot.lane.b32.xlu1 %v6227_v6, %s5541_s23  ;;  %s6510_s23 = sld [smem:[#allocation59_spill]] }
0x13d9   : > { %v4239_v36 = vld [vmem:[%s6508_s13] ss:$0 sm:$0xff] }
0x144b   : > { %v2670_v24 = vpop.xlane.xlu0 %2669 }
0x144c   : > { %v2671_v25 = vsub.f32 %v2667_v16, %v2670_v24 }
0x144e   : > { %v2672_v27 = vmul.f32 1.442695, %v2671_v25 }
0x144f   : > { %v2838_v28 = vpop.xlane.xlu1 %2837 }
0x1450   : > { %4880 = vpow2.f32 %v2672_v27  ;;  %v2839_v29 = vsub.f32 %v2835_v21, %v2838_v28  ;;  %v3479_v27 = vld [vmem:[%s6505_s1 + $0x18] sm:$0xff]  ;;  %s3883_s1 = scalar_lea.sflag [#allocation4], %s6023_s21 }
0x1452   : > { %v2840_v30 = vmul.f32 1.442695, %v2839_v29 }
0x1453   : > { %v2848_v42 = vpop.permute.xlu1 %2847 }
0x1454   : > { %4882 = vpow2.f32 %v2840_v30 }
0x1457   : > { %v3073_v49 = vpop.permute.xlu1 %3072 }
0x145a   : > { %v4881_v31 = vpop.eup %4880 }
0x145b   : > { %v2674_v33 = vsel %vm1286_vm2, %v4881_v31, 0.0 }
0x145c   : > { %2675 = vadd.xlane.f32.xlu0 %v2674_v33 }
0x145e   : > { %v4883_v34 = vpop.eup %4882 }
0x145f   : > { %v2842_v35 = vsel %vm1286_vm2, %v4883_v34, 0.0 }
0x1460   : > { %2843 = vadd.xlane.f32.xlu0 %v2842_v35 }
0x1476   : > { %2679 = vrot.lane.b32.xlu0 %v6227_v6, %s5540_s5  ;;  %s6509_s5 = sld [smem:[#allocation60_spill]] }
0x147a   : > { %3070 = vrot.lane.b32.xlu0 %v6227_v6, %s5542_s20  ;;  %s6511_s20 = sld [smem:[#allocation62_spill]] }
0x14e9   : > { %v2676_v37 = vpop.xlane.xlu0 %2675 }
0x14ea   : > { %4884 = vrcp.f32 %v2676_v37 }
0x14ed   : > { %v2844_v38 = vpop.xlane.xlu0 %2843 }
0x14ee   : > { %4886 = vrcp.f32 %v2844_v38 }
0x14f1   : > { %v2680_v39 = vpop.permute.xlu0 %2679 }
0x14f2   : > { %4461 = vmatpush3.msra.mxu1 %v2680_v39 }
0x14f3   : > { %4470 = vmatprep.subr.mxu1 %v5535_v13 }
0x14f4   : > { %v4885_v40 = vpop.eup %4884 }
0x14f5   : > { %v2678_v41 = vmul.f32 %v4885_v40, %v4881_v31  ;;  %v3071_v26 = vpop.permute.xlu0 %3070 }
0x14f7   : > { %4463 = vmatmul.mubr.msk.f32.vlgmr.msra.gmra.mrb[16].mxu1 %vm1286_vm2, %v2678_v41 }
0x14f8   : > { %v4887_v43 = vpop.eup %4886  ;;  %4471 = vmatpush3.msra.mxu1 %v2848_v42  ;;  %4472 = vmatprep.mubr.msk.f32.mxu1 %vm5534_vm1, %v5535_v13 }
0x14f9   : > { %v2846_v44 = vmul.f32 %v4887_v43, %v4883_v34  ;;  %4480 = vmatprep.subr.mxu1 %v5535_v13 }
0x14fb   : > { %4473 = vmatmul.mubr.msk.f32.vlgmr.msra.gmra.mrb[18].mxu1 %vm1286_vm2, %v2846_v44 }
0x14fc   : > { %4482 = vmatprep.mubr.msk.f32.mxu1 %vm5534_vm1, %v5535_v13  ;;  %4481 = vmatpush3.msra.mxu1 %v2755_v45 }
0x14fd   : > { %4490 = vmatprep.subr.mxu1 %v5535_v13 }
0x15ca   : > { %v2751_v46 = vpop.f32.mrb[16].mxu1 }
0x15cb   : > { %v4464_v47 = vpop.f32.mrb[17].mxu1  ;;  %4483 = vmatmul.mubr.msk.f32.vlgmr.msra.gmra.mrb[20].mxu1 %vm1286_vm2, %v2751_v46 }
0x15cc   : > { %4492 = vmatprep.mubr.msk.f32.mxu1 %vm5534_vm1, %v5535_v13  ;;  %v3592_v47 = vld [vmem:[%s6509_s5] sm:$0xff] }
0x15ce   : > { %v2919_v48 = vpop.f32.mrb[18].mxu1 }
0x15cf   : > { %v4474_v50 = vpop.f32.mrb[19].mxu1  ;;  %4478 = vmatmul.mubr.msk.f32.vlgmr.msra.gmra.mrb[20].mxu0 %vm1286_vm2, %v2919_v48  ;;  %v3593_v48 = vld [vmem:[%s6509_s5 + $0x8] sm:$0xff] }
0x15d0   : > { %4486 = vmatpush3.xpose.msk.msra.mxu0 %vm1286_vm2, %v3073_v49  ;;  %4487 = vmatprep.mubr.msk.f32.mxu0 %vm5534_vm1, %v5535_v13  ;;  %v4587_v49 = vpack.c.bf16 %v3593_v48, %v3592_v47  ;;  %v3594_v50 = vld [vmem:[%s6509_s5 + $0x10] sm:$0xff]  ;;  %v4247_v47 = vld [vmem:[%s5691_s9] ss:$0 sm:$0xff] }
0x15d1   : > { %4495 = vmatprep.subr.mxu0 %v5535_v13 }
0x15d3   : > { %4488 = vmatmul.mubr.msk.f32.vlgmr.msra.gmra.mrb[22].mxu0 %vm1286_vm2, %v3071_v26  ;;  %v3595_v26 = vld [vmem:[%s6509_s5 + $0x18] sm:$0xff] }
0x15d4   : > { %4497 = vmatprep.mubr.msk.f32.mxu0 %vm5534_vm1, %v5535_v13  ;;  %4496 = vmatpush3.msra.mxu0 %v3237_v9 }
0x15d5   : > { %4505 = vmatprep.subr.mxu0 %v5535_v13 }
0x169e   : > { %v3066_v51 = vpop.f32.mrb[20].mxu1 }
0x169f   : > { %v4484_v52 = vpop.f32.mrb[21].mxu1 }
0x16a2   : > { %v2993_v53 = vpop.f32.mrb[20].mxu0 }
0x16a3   : > { %v3067_v54 = vadd.f32 %v3066_v51, %v2993_v53  ;;  %v4479_v55 = vpop.f32.mrb[21].mxu0 }
0x16a4   : > { %v4240_v55 = vld [vmem:[%s6510_s23] ss:$0 sm:$0xff] }
0x16a6   : > { %v3144_v56 = vpop.f32.mrb[22].mxu0 }
0x16a7   : > { %v3148_v57 = vmul.f32 0.35355338, %v3144_v56  ;;  %v4489_v58 = vpop.f32.mrb[23].mxu0 }
0x16a9   : > { %v3149_v59 = vadd.f32 %v6110_v32, %v3148_v57  ;;  %v4241_v57 = vld [vmem:[#allocation23] ss:$0 sm:$0xff] }
0x16ab   : > { %v3150_v60 = vsel %vm1286_vm2, %v3149_v59, -inf }
0x16ac   : > { %3151 = vmax.xlane.f32.xlu1 %v3150_v60  ;;  %v3685_v60 = vld [vmem:[%s6511_s20] sm:$0xff] }
0x16bd   : > { %3314 = vrot.lane.b32.xlu1 %v6227_v6, %s5545_s8  ;;  %s6513_s8 = sld [smem:[#allocation66_spill]] }
0x16c1   : > { %3312 = vrot.lane.b32.xlu1 %v6227_v6, %s5544_s17  ;;  %s6512_s17 = sld [smem:[#allocation65_spill]] }
0x1739   : > { %v3152_v61 = vpop.xlane.xlu1 %3151 }
0x173a   : > { %v3153_v62 = vsub.f32 %v3149_v59, %v3152_v61  ;;  %v3686_v61 = vld [vmem:[%s6511_s20 + $0x8] sm:$0xff] }
0x173c   : > { %v3154_v63 = vmul.f32 1.442695, %v3153_v62  ;;  %v4593_v62 = vpack.c.bf16 %v3686_v61, %v3685_v60 }
0x173d   : > { %v3315_v5 = vpop.permute.xlu1 %3314 }
0x173e   : > { %4888 = vpow2.f32 %v3154_v63  ;;  %v3687_v63 = vld [vmem:[%s6511_s20 + $0x10] sm:$0xff] }
0x1741   : > { %v3313_v8 = vpop.permute.xlu1 %3312 }
0x1748   : > { %v4889_v0 = vpop.eup %4888 }
0x1749   : > { %v3156_v1 = vsel %vm1286_vm2, %v4889_v0, 0.0 }
0x174a   : > { %3157 = vadd.xlane.f32.xlu0 %v3156_v1 }
0x1760   : > { %3161 = vrot.lane.b32.xlu0 %v6227_v6, %s6506_s12  ;;  %s4249_s12 = sshll.u32 %s5729_s26, 4  ;;  %s5547_s26 = smov [#allocation29]  }
0x1761   : > { %s6359_s23 = scalar_lea.hbm %s6513_s8, %s4249_s12 }
0x17d7   : > { %v3158_v2 = vpop.xlane.xlu0 %3157 }
0x17d8   : > { %4890 = vrcp.f32 %v3158_v2  ;;  %v3689_v2 = vld [vmem:[%s6511_s20 + $0x20] sm:$0xff] }
0x17db   : > { %v3162_v3 = vpop.permute.xlu0 %3161 }
0x17dc   : > { %4491 = vmatpush3.msra.mxu1 %v3162_v3  ;;  %v3690_v3 = vld [vmem:[%s6511_s20 + $0x28] sm:$0xff] }
0x17dd   : > { %4500 = vmatprep.subr.mxu1 %v5535_v13 }
0x17e2   : > { %v4891_v23 = vpop.eup %4890 }
0x17e3   : > { %v3160_v7 = vmul.f32 %v4891_v23, %v4889_v0  ;;  %v3688_v0 = vld [vmem:[%s6511_s20 + $0x18] sm:$0xff]  ;;  %v4599_v23 = vpack.c.bf16 %v3690_v3, %v3689_v2 }
0x17e4   : > { %v4596_v1 = vpack.c.bf16 %v3688_v0, %v3687_v63 }
0x17e5   : > { %4493 = vmatmul.mubr.msk.f32.vlgmr.msra.gmra.mrb[22].mxu1 %vm1286_vm2, %v3160_v7 }
0x17e6   : > { %4501 = vmatpush3.xpose.msk.msra.mxu1 %vm1286_vm2, %v3315_v5  ;;  %4502 = vmatprep.mubr.msk.f32.mxu1 %vm5534_vm1, %v5535_v13  ;;  %v3692_v5 = vld [vmem:[%s6511_s20 + $0x38] sm:$0xff] }
0x17e7   : > { %4510 = vmatprep.subr.mxu1 %v5535_v13 }
0x17e9   : > { %4503 = vmatmul.mubr.msk.f32.vlgmr.msra.gmra.mrb[24].mxu1 %vm1286_vm2, %v3313_v8  ;;  %v4242_v8 = vld [vmem:[#allocation25] ss:$0 sm:$0xff] }
0x17ea   : > { %4512 = vmatprep.mubr.msk.f32.mxu1 %vm5534_vm1, %v5535_v13  ;;  %4511 = vmatpush3.msra.mxu1 %v3479_v27 }
0x17eb   : > { %4592 = vmatprep.subr.bf16.mxu1 %v5533_v10 }
0x18b8   : > { %v3233_v11 = vpop.f32.mrb[22].mxu1 }
0x18b9   : > { %v4494_v12 = vpop.f32.mrb[23].mxu1  ;;  %4498 = vmatmul.mubr.msk.f32.vlgmr.msra.gmra.mrb[24].mxu0 %vm1286_vm2, %v3233_v11 }
0x18ba   : > { %4507 = vmatprep.mubr.msk.f32.mxu0 %vm5534_vm1, %v5535_v13 }
0x18bc   : > { %v3386_v14 = vpop.f32.mrb[24].mxu1 }
0x18bd   : > { %v3390_v15 = vmul.f32 0.35355338, %v3386_v14  ;;  %v4504_v16 = vpop.f32.mrb[25].mxu1 }
0x18bf   : > { %v3391_v17 = vadd.f32 %v6110_v32, %v3390_v15 }
0x18c1   : > { %v3392_v18 = vsel %vm1286_vm2, %v3391_v17, -inf }
0x18c2   : > { %3393 = vmax.xlane.f32.xlu0 %v3392_v18 }
0x18d8   : > { %3403 = vrot.lane.b32.xlu0 %v6227_v6, %s6507_s3  ;;  %s1165_s3 = scalar_lea.vmem [#allocation29], %s6023_s21 }
0x18d9   : > { %s3895_s13 = sshll.u32 %s1165_s3, 4  ;;  %s6361_s13 = int_to_ptr.vmem [resolvable:$true] %s3895_s13 }
0x18da   : > { %s5382_s4 = scalar_lea.vmem %s6361_s13, 16 }
0x18db   : > { %p5383_p2 = scmp.ne.s32.totalorder %s6361_s13, %s5382_s4 }
0x18dd   : > { %p5384_p10 = pnand %p5383_p2, %p6514_p5 }
0x18df   : > { %p5385_p11 = pneg %p5384_p10 }
0x194f   : > { %v3394_v19 = vpop.xlane.xlu0 %3393 }
0x1950   : > { %v3395_v20 = vsub.f32 %v3391_v17, %v3394_v19 }
0x1952   : > { %v3396_v21 = vmul.f32 1.442695, %v3395_v20 }
0x1953   : > { %v3404_v22 = vpop.permute.xlu0 %3403 }
0x1954   : > { %4892 = vpow2.f32 %v3396_v21  ;;  %4506 = vmatpush3.msra.mxu0 %v3404_v22 }
0x1955   : > { %4586 = vmatprep.subr.bf16.mxu0 %v5533_v10 }
0x195e   : > { %v4893_v24 = vpop.eup %4892 }
0x195f   : > { %v3398_v25 = vsel %vm1286_vm2, %v4893_v24, 0.0 }
0x1960   : > { %3399 = vadd.xlane.f32.xlu1 %v3398_v25 }
0x198c   : > { %v3307_v32 = vpop.f32.mrb[24].mxu0 }
0x198d   : > { %v3311_v28 = vadd.f32 %v3307_v32, %v3067_v54  ;;  %v4499_v6 = vpop.f32.mrb[25].mxu0 }
0x19ed   : > { %v3400_v29 = vpop.xlane.xlu1 %3399 }
0x19ee   : > { %4894 = vrcp.f32 %v3400_v29 }
0x19f8   : > { %v4895_v30 = vpop.eup %4894 }
0x19f9   : > { %v3402_v31 = vmul.f32 %v4895_v30, %v4893_v24  ;;  %v4244_v24 = vld [vmem:[#allocation26] ss:$0 sm:$0xff] }
0x19fb   : > { %4508 = vmatmul.mubr.msk.f32.vlgmr.msra.gmra.mrb[26].mxu0 %vm1286_vm2, %v3402_v31 }
0x19fc   : > { %4523 = vmatprep.mubr.msk.f32.mxu0 %vm5534_vm1, %v5535_v13  ;;  %4588 = vmatpush3.bf16.msra.mxu0 %v4587_v49  ;;  %v3807_v49 = vld [vmem:[%s6512_s17] sm:$0x1]  ;;  %s5386_s17 = sshll.u32 %s5547_s26, 4  ;;  %s5387_s17 = int_to_ptr.vmem [resolvable:$false] %s5386_s17 }
0x19fd   : > { %4589 = vmatprep.subr.bf16.mxu0 %v5533_v10  ;;  %s5388_s5 = scalar_lea.vmem %s5387_s17, 32  ;;  %p5389_p13 = scmp.lt.s32.totalorder %s6361_s13, %s5387_s17 }
0x19fe   : > { %p5390_p1 = scmp.lt.s32.totalorder %s5388_s5, %s5382_s4 }
0x1a00   : > { %p5391_p6 = por %p5390_p1, %p5389_p13 }
0x1a02   : > { %p5392_p0 = pnand %p5391_p6, %p5385_p11 }
0x1ace   : > { %v3475_v33 = vpop.f32.mrb[26].mxu0 }
0x1acf   : > { %v4509_v34 = vpop.f32.mrb[27].mxu0  ;;  %4513 = vmatmul.mubr.msk.f32.vlgmr.msra.gmra.mrb[26].mxu1 %vm1286_vm2, %v3475_v33 }
0x1ad0   : > { %4542 = vmatprep.mubr.msk.f32.mxu1 %vm5534_vm1, %v5535_v13  ;;  %4594 = vmatpush3.bf16.msra.mxu1 %v4593_v62 }
0x1ad1   : > { %4595 = vmatprep.subr.bf16.mxu1 %v5533_v10 }
0x1ad4   : > { %4597 = vmatpush3.bf16.msra.mxu1 %v4596_v1 }
0x1ad5   : > { %4598 = vmatprep.subr.bf16.mxu1 %v5533_v10 }
0x1ad8   : > { %4600 = vmatpush3.bf16.msra.mxu1 %v4599_v23 }
0x1ad9   : > { %4601 = vmatprep.subr.bf16.mxu1 %v5533_v10 }
0x1ba2   : > { %v3549_v35 = vpop.f32.mrb[26].mxu1 }
0x1ba3   : > { %v3553_v37 = vadd.f32 %v3549_v35, %v3311_v28  ;;  %v4514_v38 = vpop.f32.mrb[27].mxu1  ;;  %v3803_v35 = vld [vmem:[%s5696_s27] sm:$0xff] }
0x1ba4   : > { %v3805_v38 = vld [vmem:[%s5696_s27 + $0x10] sm:$0xff] }
0x1ba5   : > { %v3561_v39 = vadd.f32 %v4239_v36, %v3553_v37  ;;  %v3804_v36 = vld [vmem:[%s5696_s27 + $0x8] sm:$0xff] }
0x1ba6   : > { %v4605_v37 = vpack.c.bf16 %v3804_v36, %v3803_v35 }
0x1ba7   : > { %v3562_v40 = vadd.f32 %v3561_v39, %v6221_v4  ;;  %v4590_v4 = vpack.c.bf16 %v3595_v26, %v3594_v50  ;;  %v3806_v39 = vld [vmem:[%s5696_s27 + $0x18] sm:$0xff] }
0x1ba9   : > { %v3563_v41 = vsel %vm1168_vm0, %v3562_v40, 0.0  ;;  %4591 = vmatpush3.bf16.msra.mxu0 %v4590_v4 }
0x1baa   : > { %3564 = vadd.xlane.f32.xlu1 %v3563_v41  ;;  %4604 = vmatprep.subr.bf16.mxu0 %v5533_v10 }
0x1c37   : > { %v3565_v42 = vpop.xlane.xlu1 %3564 }
0x1c38   : > { %v3566_v43 = vmul.f32 0.03125, %v3565_v42 }
0x1c3a   : > { %v3567_v44 = vsub.f32 %v3562_v40, %v3566_v43  ;;  %v4608_v40 = vpack.c.bf16 %v3806_v39, %v3805_v38 }
0x1c3c   : > { %v3568_v45 = vmul.f32 %v3567_v44, %v3567_v44 }
0x1c3e   : > { %v3569_v46 = vsel %vm1168_vm0, %v3568_v45, 0.0  ;;  %v4246_v45 = vld [vmem:[#allocation28] ss:$0 sm:$0xff] }
0x1c3f   : > { %3570 = vadd.xlane.f32.xlu1 %v3569_v46 }
0x1ccc   : > { %v3571_v51 = vpop.xlane.xlu1 %3570 }
0x1ccd   : > { %v3572_v52 = vmul.f32 0.03125, %v3571_v51 }
0x1ccf   : > { %v3573_v53 = vadd.f32 1e-05, %v3572_v52 }
0x1cd1   : > { %4896 = vrsqrt.f32 %v3573_v53 }
0x1cdb   : > { %v4897_v54 = vpop.eup %4896 }
0x1cdc   : > { %v3575_v56 = vmul.f32 %v4897_v54, %v3567_v44 }
0x1cde   : > { %v3583_v58 = vmul.f32 %v4240_v55, %v3575_v56 }
0x1ce0   : > { %v3591_v59 = vadd.f32 %v4241_v57, %v3583_v58 }
0x1ce2   : > { %4524 = vmatmul.mubr.msk.f32.vlgmr.msra.gmra.mrb[28].mxu0 %vm1168_vm0, %v3591_v59 }
0x1ce3   : > { %4553 = vmatprep.mubr.msk.f32.mxu0 %vm5534_vm1, %v5535_v13  ;;  %v3691_v13 = vld [vmem:[%s6511_s20 + $0x30] sm:$0xff]  ;;  %4606 = vmatpush3.bf16.msra.mxu0 %v4605_v37 }
0x1ce4   : > { %v4602_v7 = vpack.c.bf16 %v3692_v5, %v3691_v13  ;;  %4607 = vmatprep.subr.bf16.mxu0 %v5533_v10 }
0x1ce6   : > { %4603 = vmatpush3.bf16.msra.mxu1 %v4602_v7 }
0x1ce7   : > { %4609 = vmatpush3.bf16.msra.mxu0 %v4608_v40 }
0x1db5   : > { %v3672_v9 = vpop.f32.mrb[28].mxu0 }
0x1db6   : > { %v3673_v11 = vadd.f32 %v4242_v8, %v3672_v9  ;;  %v4525_v12 = vpop.f32.mrb[29].mxu0 }
0x1db8   : > { %v3676_v14 = vmul.f32 %v3673_v11, %v3673_v11 }
0x1dba   : > { %v3677_v15 = vmul.f32 %v3676_v14, %v3673_v11 }
0x1dbc   : > { %v3678_v16 = vmul.f32 0.044715, %v3677_v15 }
0x1dbe   : > { %v3679_v17 = vadd.f32 %v3678_v16, %v3673_v11 }
0x1dc0   : > { %v3680_v18 = vmul.f32 0.7978846, %v3679_v17 }
0x1dc2   : > { %4898 = vtanh.f32 %v3680_v18 }
0x1dcc   : > { %v4899_v19 = vpop.eup %4898 }
0x1dcd   : > { %v3682_v20 = vadd.f32 1.0, %v4899_v19 }
0x1dcf   : > { %v3683_v21 = vmul.f32 0.5, %v3682_v20 }
0x1dd1   : > { %v3684_v22 = vmul.f32 %v3683_v21, %v3673_v11 }
0x1dd3   : > { %4543 = vmatmul.mubr.msk.f32.vlgmr.msra.gmra.mrb[28].mxu1 %vm2401_vm3, %v3684_v22 }
0x1ea6   : > { %v3769_v25 = vpop.f32.mrb[28].mxu1 }
0x1ea7   : > { %v3770_v27 = vadd.f32 %v4244_v24, %v3769_v25  ;;  %v4544_v32 = vpop.f32.mrb[29].mxu1 }
0x1ea9   : > { %v3773_v28 = vadd.f32 %v3770_v27, %v3591_v59 }
0x1eab   : > { %v3774_v6 = vsel %vm1168_vm0, %v3773_v28, 0.0 }
0x1eac   : > { %3775 = vadd.xlane.f32.xlu1 %v3774_v6 }
0x1f39   : > { %v3776_v29 = vpop.xlane.xlu1 %3775 }
0x1f3a   : > { %v3777_v30 = vmul.f32 0.03125, %v3776_v29 }
0x1f3c   : > { %v3778_v31 = vsub.f32 %v3773_v28, %v3777_v30 }
0x1f3e   : > { %v3779_v33 = vmul.f32 %v3778_v31, %v3778_v31 }
0x1f40   : > { %v3780_v34 = vsel %vm1168_vm0, %v3779_v33, 0.0 }
0x1f41   : > { %3781 = vadd.xlane.f32.xlu1 %v3780_v34 }
0x1fce   : > { %v3782_v41 = vpop.xlane.xlu1 %3781 }
0x1fcf   : > { %v3783_v42 = vmul.f32 0.03125, %v3782_v41 }
0x1fd1   : > { %v3784_v43 = vadd.f32 1e-05, %v3783_v42 }
0x1fd3   : > { %4900 = vrsqrt.f32 %v3784_v43 }
0x1fdd   : > { %v4901_v44 = vpop.eup %4900 }
0x1fde   : > { %v3786_v46 = vmul.f32 %v4901_v44, %v3778_v31 }
0x1fe0   : > { %v3794_v48 = vmul.f32 %v4246_v45, %v3786_v46 }
0x1fe2   : > { %v3802_v10 = vadd.f32 %v4247_v47, %v3794_v48 }
0x1fe4   : > { %4554 = vmatmul.mubr.msk.f32.vlgmr.msra.gmra.mrb[30].mxu0 %vm1168_vm0, %v3802_v10 }
0x20b7   : > { %v3877_v50 = vpop.f32.mrb[30].mxu0 }
0x20b8   : > { %v3878_v26 = vadd.f32 %v3877_v50, %v3807_v49  ;;  %v4555_v4 = vpop.f32.mrb[31].mxu0 }
0x20ba   : > { %3881 = vst [vmem:[%s1165_s3] sm:$0x1] %v3878_v26 }
0x20bb   : > { %5395 = shalt.err (!%p5392_p0)
}
0x20bc   : > { %s5396_s21 = scalar_lea.hbm %s6359_s23, 16  ;;  %s5400_s12 = scalar_lea.hbm %s6513_s8, 32 }
0x20bd   : > { %p5397_p4 = scmp.ne.s32.totalorder %s6359_s23, %s5396_s21  ;;  %p5401_p8 = scmp.lt.u32.totalorder %s6359_s23, %s6513_s8 }
0x20be   : > { %p5402_p9 = scmp.lt.u32.totalorder %s5400_s12, %s5396_s21  ;;  %p5404_p2 = scmp.lt.u32.totalorder %s5396_s21, %s6359_s23 }
0x20bf   : > { %p5398_p12 = pnand %p5397_p4, %p6514_p5 }
0x20c0   : > { %p5403_p3 = por %p5402_p9, %p5401_p8 }
0x20c1   : > { %p5399_p7 = pneg %p5398_p12 }
0x20c2   : > { %p5405_p10 = por %p5404_p2, %p5403_p3 }
0x20c4   : > { %p5406_p11 = pnand %p5405_p10, %p5399_p7 }
0x20c6   : > { %5409 = shalt.err (!%p5406_p11)
}
0x20c7   : > { %4674 = dma.vmem_to_hbm [thread:$0]  (%p6514_p5), %s6361_s13, 16, %s6359_s23, %s3883_s1  }
0x20c8 PF: > { %s3907_s4 = sand.u32 1, %s5472_s15   ;;  %p6515_p13 = scmp.ne.s32.totalorder %s6478_s11, 0 }
0x20c9   : > { %p6516_p1 = scmp.ge.s32.totalorder %s5484_s0, 2  ;;  %s3908_s5 = scalar_lea.sflag [#allocation4], %s3907_s4 }
0x20cb   : > { %p4730_p6 = pnand %p6516_p1, %p6515_p13 }
0x20cd   : > { %5467 = dma.done.wait (!%p4730_p6), %s3908_s5, 16  }
0x20ce   : > { %5469 = vsyncadd (!%p4730_p6), %s3908_s5, 4294967280  ;;  %p84_p0 = scmp.ge.s32.totalorder %s5932_s2, 4   ;;  %s6517_s15 = smov %s5476_s16 }
0x20cf   : > { %s6518_s16 = smov %s5480_s18  ;;  %s6519_s18 = smov %s5944_s30 }
0x20d0   : > { %s6520_s0 = smov %s5932_s2  ;;  %86 = sbr.rel (!%p84_p0) target bundleno = 81 (0x51), region = 288 }
0x20d7   :  { %3912 = vsyncpa [#allocation3], 1 }
0x20d8   :  { %3914 = vsyncpa [#allocation3 + $0x1], 1 }
0x20d9   :  { %3915 = vsyncpa [#allocation6], 1 }
0x20da   :  { %3917 = vsyncpa [#allocation6 + $0x1], 1 }
0x20db   :  { %3918 = vsyncpa [#allocation9], 1 }
0x20dc   :  { %3919 = vsyncpa [#allocation12], 1 }
0x20dd   :  { %3920 = vsyncpa [#allocation15], 1 }
0x20de   :  { %3921 = vsyncpa [#allocation18], 1 }
0x20df   :  { %3922 = vsyncpa [#allocation21], 1 }
0x20e0   :  { %3923 = vsyncpa [#allocation24], 1 }
0x20e1   :  { %3924 = vsyncpa [#allocation27], 1 }
0x20e2   :  { %3925 = vsyncpa [#allocation4], 1 }
0x20e3   :  { %3927 = vsyncpa [#allocation4 + $0x1], 1 }

</bundles_post_ra>
